<compile_context>
chip_gen: v6e
topology: v6e:2x2x1
jax: 0.10.0
libtpu: 0.0.40
codegen_flags: <defaults>
</compile_context>

<pallas_src>
import functools

import jax
import jax.numpy as jnp
from jax.experimental import pallas as pl
from jax.experimental.pallas import tpu as pltpu


_VMEM_LIMIT = 32 * 1024 * 1024   # <= v7x scoped default, raises v5e's 16 MiB
_BN_EPS = 1e-5


# ============================================================================
# Pallas kernels
# ============================================================================
def _make_point_mlp_pool_kernel(num_layers, out_channels):
    """Per-point MLP (num_layers folded matmuls) + max-pool over the N tile.

    Ref order: (x, w0, t0, ..., w_{L-1}, t_{L-1}, feat).
    Hidden layers apply (+shift, ReLU) per point; the last layer's shift+ReLU
    is hoisted past the max-pool and applied once on the pooled (TB, C) block.
    The output block is resident across the N grid axis (running max).
    """
    def kernel(x_ref, *refs):
        feat_ref = refs[-1]
        wt = refs[:-1]
        n = pl.program_id(1)

        @pl.when(n == 0)
        def _init():
            feat_ref[...] = jnp.full_like(feat_ref, -jnp.inf)

        tb, tn, cin = x_ref.shape
        h = x_ref[...].reshape(tb * tn, cin)
        for l in range(num_layers):
            w_ref, t_ref = wt[2 * l], wt[2 * l + 1]
            h = jnp.dot(h.astype(jnp.bfloat16), w_ref[...],
                        preferred_element_type=jnp.float32)
            if l < num_layers - 1:
                h = jnp.maximum(h + t_ref[...], 0.0)

        # running max over this N tile (last layer is still pre-shift/ReLU)
        m = jnp.max(h.reshape(tb, tn, out_channels), axis=1)      # [TB, C]
        feat_ref[...] = jnp.maximum(feat_ref[...], m)

        @pl.when(n == pl.num_programs(1) - 1)
        def _epilogue():
            t_last = wt[2 * num_layers - 1]
            feat_ref[...] = jnp.maximum(feat_ref[...] + t_last[...], 0.0)

    return kernel


def _pointwise_conv_kernel(x_ref, w_ref, t_ref, h_ref):
    """One folded 1x1-conv layer (+shift, ReLU), per point, no pooling."""
    tb, tn, cin = x_ref.shape
    x = x_ref[...].reshape(tb * tn, cin).astype(jnp.bfloat16)
    h = jnp.dot(x, w_ref[...], preferred_element_type=jnp.float32) + t_ref[...]
    h_ref[...] = jnp.maximum(h, 0.0).reshape(tb, tn, -1)


# ============================================================================
# pallas_call wrappers
# ============================================================================
def _pick_tile_b(b):
    # (8, C) output tiles -> dense stores; otherwise take the whole batch.
    return 8 if b % 8 == 0 else b


def _pick_tile_n(n, cap):
    for t in (1024, 512, 256, 128, 64, 32, 16, 8):
        if t <= cap and n % t == 0:
            return t
    return n


def point_mlp_pool(x, layers, *, tile_n=None):
    """x: [B, N, Cin]; layers: [(w_bf16 [Ci,Co], shift_f32 [1,Co]), ...].

    Computes relu( max_N( relu(...relu(x@w0+t0)...) @ w_last ) + t_last )
    i.e. a per-point MLP followed by a max-pool over points -> [B, C_last].
    """
    B, N, Cin = x.shape
    C_out = layers[-1][0].shape[1]
    tb = _pick_tile_b(B)
    if tile_n is None:
        tile_n = _pick_tile_n(N, max(8, 1024 // tb))
    assert N % tile_n == 0, f"N={N} must be divisible by tile_n={tile_n}"

    in_specs = [pl.BlockSpec((tb, tile_n, Cin), lambda b, n: (b, n, 0))]
    flat = [x]
    for (w, t) in layers:
        in_specs.append(pl.BlockSpec(w.shape, lambda b, n: (0, 0)))
        in_specs.append(pl.BlockSpec(t.shape, lambda b, n: (0, 0)))
        flat += [w, t]

    return pl.pallas_call(
        _make_point_mlp_pool_kernel(len(layers), C_out),
        out_shape=jax.ShapeDtypeStruct((B, C_out), jnp.float32),
        grid_spec=pltpu.PrefetchScalarGridSpec(
            num_scalar_prefetch=0,
            grid=(B // tb, N // tile_n),        # reduction (N) axis last
            in_specs=in_specs,
            out_specs=pl.BlockSpec((tb, C_out), lambda b, n: (b, 0)),
        ),
        compiler_params=pltpu.CompilerParams(
            dimension_semantics=("parallel", "arbitrary"),
            vmem_limit_bytes=_VMEM_LIMIT,
        ),
    )(*flat)


def pointwise_conv_relu(x, w, t, *, tile_n=None):
    """Per-point relu(x @ w + t): [B, N, Cin] -> [B, N, Cout]."""
    B, N, Cin = x.shape
    C_out = w.shape[1]
    tb = _pick_tile_b(B)
    if tile_n is None:
        tile_n = _pick_tile_n(N, max(8, 2048 // tb))
    assert N % tile_n == 0, f"N={N} must be divisible by tile_n={tile_n}"

    return pl.pallas_call(
        _pointwise_conv_kernel,
        out_shape=jax.ShapeDtypeStruct((B, N, C_out), jnp.float32),
        grid_spec=pltpu.PrefetchScalarGridSpec(
            num_scalar_prefetch=0,
            grid=(B // tb, N // tile_n),
            in_specs=[pl.BlockSpec((tb, tile_n, Cin), lambda b, n: (b, n, 0)),
                      pl.BlockSpec(w.shape, lambda b, n: (0, 0)),
                      pl.BlockSpec(t.shape, lambda b, n: (0, 0))],
            out_specs=pl.BlockSpec((tb, tile_n, C_out), lambda b, n: (b, n, 0)),
        ),
        compiler_params=pltpu.CompilerParams(
            dimension_semantics=("parallel", "parallel"),
            vmem_limit_bytes=_VMEM_LIMIT,
        ),
    )(x, w, t)


# ----------------------------------------------------------------------------
# Plain-JAX twins of the two Pallas ops (identical math, used for validation).
# ----------------------------------------------------------------------------
def _mlp_pool_jax(x, layers, *, tile_n=None):
    del tile_n
    h = x
    for i, (w, t) in enumerate(layers):
        h = jnp.dot(h.astype(jnp.bfloat16), w, preferred_element_type=jnp.float32)
        if i < len(layers) - 1:
            h = jnp.maximum(h + t, 0.0)
    return jnp.maximum(jnp.max(h, axis=1) + layers[-1][1], 0.0)


def _pointwise_jax(x, w, t, *, tile_n=None):
    del tile_n
    h = jnp.dot(x.astype(jnp.bfloat16), w, preferred_element_type=jnp.float32) + t
    return jnp.maximum(h, 0.0)


# ============================================================================
# Forward passes
# ============================================================================
def stnkd_forward(x, stn, k, *, tile_n=None, mlp_pool_fn=point_mlp_pool):
    """STNKd: x [B, N, k] (channels-last) -> transform matrices [B, k, k]."""
    feat = mlp_pool_fn(x, stn["mlp"], tile_n=tile_n)               # [B, 1024]
    fc = stn["fc"]
    # Tiny FC head: left to XLA on purpose (cheaper than another pallas_call).
    f = jnp.maximum(feat @ fc["w1"] + fc["t1"], 0.0)
    f = jnp.maximum(f @ fc["w2"] + fc["t2"], 0.0)
    out = f @ fc["w3"] + fc["b3"][None, :]
    out = out + jnp.eye(k, dtype=jnp.float32).reshape(1, k * k)
    return out.reshape(-1, k, k)


def pointnetfeat_forward(pointcloud, params, *, input_transform=False,
                         feature_transform=False, tile_n=None,
                         mlp_pool_fn=point_mlp_pool,
                         pointwise_fn=pointwise_conv_relu):
    """PointNetFeat: pointcloud [B, N, 3] -> global feature [B, 1024]."""
    x = pointcloud                              # channels-last, no transpose
    if input_transform:
        t3 = stnkd_forward(x, params["stn3"], 3, tile_n=tile_n,
                           mlp_pool_fn=mlp_pool_fn)                # [B, 3, 3]
        x = jnp.einsum("bij,bnj->bni", t3, x)   # tiny, left to XLA
    (w1, t1), (w2, t2) = params["pf"]["layers"]
    if feature_transform:
        h = pointwise_fn(x, w1, t1, tile_n=tile_n)                 # [B, N, 64]
        t64 = stnkd_forward(h, params["stn64"], 64, tile_n=tile_n,
                            mlp_pool_fn=mlp_pool_fn)               # [B, 64, 64]
        h = jnp.einsum("bij,bnj->bni", t64, h)  # left to XLA
        feat = mlp_pool_fn(h, [(w2, t2)], tile_n=tile_n)           # [B, 1024]
    else:
        # conv1 + conv2 + max-pool fused into a single pass over the points
        feat = mlp_pool_fn(x, [(w1, t1), (w2, t2)], tile_n=tile_n)
    return feat


# ============================================================================
# Parameter construction (deterministic, synthetic) + folding
# ============================================================================
def _linear(key, cin, cout):
    kw, kb = jax.random.split(key)
    w = jax.random.normal(kw, (cin, cout), jnp.float32) / jnp.sqrt(cin)
    b = 0.05 * jax.random.normal(kb, (cout,), jnp.float32)
    return {"w": w, "b": b}


def _bn(key, c):
    k1, k2, k3, k4 = jax.random.split(key, 4)
    return {"gamma": 1.0 + 0.05 * jax.random.normal(k1, (c,), jnp.float32),
            "beta": 0.05 * jax.random.normal(k2, (c,), jnp.float32),
            "mean": 0.05 * jax.random.normal(k3, (c,), jnp.float32),
            "var": jnp.abs(0.5 + 0.1 * jax.random.normal(k4, (c,), jnp.float32))}


def _init_stn_raw(key, k):
    ks = iter(jax.random.split(key, 16))
    return {"c1": _linear(next(ks), k, 64),     "bn1": _bn(next(ks), 64),
            "c2": _linear(next(ks), 64, 128),   "bn2": _bn(next(ks), 128),
            "c3": _linear(next(ks), 128, 1024), "bn3": _bn(next(ks), 1024),
            "f1": _linear(next(ks), 1024, 512), "bn4": _bn(next(ks), 512),
            "f2": _linear(next(ks), 512, 256),  "bn5": _bn(next(ks), 256),
            "f3": _linear(next(ks), 256, k * k)}


def init_raw_params(key, input_transform, feature_transform):
    ks = iter(jax.random.split(key, 16))
    p = {"pf_conv1": {"a": _linear(next(ks), 3, 64),
                      "b": _linear(next(ks), 64, 64),
                      "bn": _bn(next(ks), 64)},
         "pf_conv2": {"a": _linear(next(ks), 64, 64),
                      "b": _linear(next(ks), 64, 128),
                      "c": _linear(next(ks), 128, 1024),
                      "bn": _bn(next(ks), 1024)}}
    if input_transform:
        p["stn3"] = _init_stn_raw(next(ks), 3)
    if feature_transform:
        p["stn64"] = _init_stn_raw(next(ks), 64)
    return p


def _chain(*layers):
    """Collapse a chain of bias-only 1x1 convs (linear layers) into one."""
    w, b = layers[0]["w"], layers[0]["b"]
    for l in layers[1:]:
        b = b @ l["w"] + l["b"]
        w = w @ l["w"]
    return w, b


def _fold_bn(w, b, bn):
    """Fold inference BN into (weights, shift).  The scale goes INTO the
    weights so the remaining shift+ReLU commutes with the max-pool."""
    scale = bn["gamma"] / jnp.sqrt(bn["var"] + _BN_EPS)
    return w * scale[None, :], (b - bn["mean"]) * scale + bn["beta"]


def _kernel_layer(w, t):
    return (w.astype(jnp.bfloat16), t.reshape(1, -1).astype(jnp.float32))


def _fold_stn(raw):
    mlp = []
    for c, bn in (("c1", "bn1"), ("c2", "bn2"), ("c3", "bn3")):
        w, t = _fold_bn(raw[c]["w"], raw[c]["b"], raw[bn])
        mlp.append(_kernel_layer(w, t))
    w4, t4 = _fold_bn(raw["f1"]["w"], raw["f1"]["b"], raw["bn4"])
    w5, t5 = _fold_bn(raw["f2"]["w"], raw["f2"]["b"], raw["bn5"])
    return {"mlp": mlp,
            "fc": {"w1": w4, "t1": t4, "w2": w5, "t2": t5,
                   "w3": raw["f3"]["w"], "b3": raw["f3"]["b"]}}


def fold_params(raw, input_transform, feature_transform):
    c1, c2 = raw["pf_conv1"], raw["pf_conv2"]
    w1, b1 = _chain(c1["a"], c1["b"])
    w1, t1 = _fold_bn(w1, b1, c1["bn"])
    w2, b2 = _chain(c2["a"], c2["b"], c2["c"])
    w2, t2 = _fold_bn(w2, b2, c2["bn"])
    p = {"pf": {"layers": [_kernel_layer(w1, t1), _kernel_layer(w2, t2)]}}
    if input_transform:
        p["stn3"] = _fold_stn(raw["stn3"])
    if feature_transform:
        p["stn64"] = _fold_stn(raw["stn64"])
    return p


# ============================================================================
# Literal layer-by-layer f32 reference (original module semantics, eval mode)
# ============================================================================
def _bn_infer(h, bn):
    return (h - bn["mean"]) / jnp.sqrt(bn["var"] + _BN_EPS) * bn["gamma"] + bn["beta"]


def _stn_reference(x, raw, k):
    h = jnp.maximum(_bn_infer(x @ raw["c1"]["w"] + raw["c1"]["b"], raw["bn1"]), 0.0)
    h = jnp.maximum(_bn_infer(h @ raw["c2"]["w"] + raw["c2"]["b"], raw["bn2"]), 0.0)
    h = jnp.maximum(_bn_infer(h @ raw["c3"]["w"] + raw["c3"]["b"], raw["bn3"]), 0.0)
    feat = jnp.max(h, axis=1)
    f = jnp.maximum(_bn_infer(feat @ raw["f1"]["w"] + raw["f1"]["b"], raw["bn4"]), 0.0)
    f = jnp.maximum(_bn_infer(f @ raw["f2"]["w"] + raw["f2"]["b"], raw["bn5"]), 0.0)
    out = f @ raw["f3"]["w"] + raw["f3"]["b"][None, :]
    out = out + jnp.eye(k, dtype=jnp.float32).reshape(1, k * k)
    return out.reshape(-1, k, k)


def pointnetfeat_reference(pointcloud, raw, *, input_transform, feature_transform):
    x = pointcloud
    if input_transform:
        x = jnp.einsum("bij,bnj->bni", _stn_reference(x, raw["stn3"], 3), x)
    c1 = raw["pf_conv1"]
    h = (x @ c1["a"]["w"] + c1["a"]["b"]) @ c1["b"]["w"] + c1["b"]["b"]
    h = jnp.maximum(_bn_infer(h, c1["bn"]), 0.0)
    if feature_transform:
        h = jnp.einsum("bij,bnj->bni", _stn_reference(h, raw["stn64"], 64), h)
    c2 = raw["pf_conv2"]
    h = ((h @ c2["a"]["w"] + c2["a"]["b"]) @ c2["b"]["w"] + c2["b"]["b"]) \
        @ c2["c"]["w"] + c2["c"]["b"]
    h = jnp.maximum(_bn_infer(h, c2["bn"]), 0.0)
    return jnp.max(h, axis=1)


# ============================================================================
# Test
# ============================================================================
def _max_rel_err(a, b):
    scale = jnp.maximum(jnp.max(jnp.abs(b)), 1.0)
    return float(jnp.max(jnp.abs(a - b)) / scale)


if __name__ == "__main__":
    B, N = 2, 256          # small shapes; tile_n=128 exercises the N-tiled accumulator
    key = jax.random.PRNGKey(0)
    k_pts, k_par = jax.random.split(key)
    pointcloud = jax.random.normal(k_pts, (B, N, 3), jnp.float32)

    for input_transform, feature_transform in ((False, False), (True, True)):
        raw = init_raw_params(k_par, input_transform, feature_transform)
        params = fold_params(raw, input_transform, feature_transform)

        fwd = jax.jit(functools.partial(
            pointnetfeat_forward, input_transform=input_transform,
            feature_transform=feature_transform, tile_n=128))
        feat = jax.block_until_ready(fwd(pointcloud, params))
        assert feat.shape == (B, 1024)

        # (1) tight check vs. identical math (folded bf16 weights) in plain JAX
        matched = pointnetfeat_forward(
            pointcloud, params, input_transform=input_transform,
            feature_transform=feature_transform,
            mlp_pool_fn=_mlp_pool_jax, pointwise_fn=_pointwise_jax)
        err = _max_rel_err(feat, matched)
        assert err < 2e-3, f"kernel vs matched-math reference: err={err}"

        # (2) sanity check vs. literal layer-by-layer f32 reference
        #     (only difference is bf16 matmul inputs; accumulation stays f32)
        ref = pointnetfeat_reference(pointcloud, raw,
                                     input_transform=input_transform,
                                     feature_transform=feature_transform)
        err = _max_rel_err(feat, ref)
        assert err < 0.1, f"kernel vs f32 reference: err={err}"

    print("KERNEL_OK")
</pallas_src>

<mosaic_0001>
module attributes {stable_mosaic.version = 11 : i64} {
  func.func @kernel(%arg0: i32, %arg1: i32, %arg2: memref<2x128x3xf32, #tpu.memory_space<vmem>>, %arg3: memref<3x64xbf16, #tpu.memory_space<vmem>>, %arg4: memref<1x64xf32, #tpu.memory_space<vmem>>, %arg5: memref<64x1024xbf16, #tpu.memory_space<vmem>>, %arg6: memref<1x1024xf32, #tpu.memory_space<vmem>>, %arg7: memref<2x1024xf32, #tpu.memory_space<vmem>>) attributes {dimension_semantics = [#tpu.dimension_semantics<parallel>, #tpu.dimension_semantics<arbitrary>], iteration_bounds = array<i64: 1, 2>, scalar_prefetch = 0 : i64, scratch_operands = 0 : i64, tpu.core_type = #tpu.core_type<tc>, window_params = [{transform_indices = @transform_0, window_bounds = array<i64: 2, 128, 3>}, {pipeline_mode = #tpu.pipeline_mode<synchronous>, transform_indices = @transform_1, window_bounds = array<i64: 3, 64>}, {pipeline_mode = #tpu.pipeline_mode<synchronous>, transform_indices = @transform_2, window_bounds = array<i64: 1, 64>}, {pipeline_mode = #tpu.pipeline_mode<synchronous>, transform_indices = @transform_3, window_bounds = array<i64: 64, 1024>}, {pipeline_mode = #tpu.pipeline_mode<synchronous>, transform_indices = @transform_4, window_bounds = array<i64: 1, 1024>}, {transform_indices = @transform_5, window_bounds = array<i64: 2, 1024>}]} {
    %c0_i32 = arith.constant 0 : i32
    %0 = arith.cmpi eq, %arg1, %c0_i32 : i32
    %1 = arith.extui %0 : i1 to i32
    %c0_i32_0 = arith.constant 0 : i32
    %2 = arith.cmpi ne, %1, %c0_i32_0 : i32
    scf.if %2 {
      %cst_17 = arith.constant 0xFF800000 : f32
      %24 = vector.broadcast %cst_17 : f32 to vector<2x1024xf32>
      %c0_18 = arith.constant 0 : index
      %c0_19 = arith.constant 0 : index
      %25 = vector.load %arg7[%c0_18, %c0_19] : memref<2x1024xf32, #tpu.memory_space<vmem>>, vector<2x1024xf32>
      tpu.vector_store %arg7[%c0_18, %c0_19], %24 {strides = array<i32>} : memref<2x1024xf32, #tpu.memory_space<vmem>>, vector<2x1024xf32>,
    } else {
    }
    %c0 = arith.constant 0 : index
    %c0_1 = arith.constant 0 : index
    %c0_2 = arith.constant 0 : index
    %3 = vector.load %arg2[%c0, %c0_1, %c0_2] : memref<2x128x3xf32, #tpu.memory_space<vmem>>, vector<2x128x3xf32>
    %4 = vector.shape_cast %3 : vector<2x128x3xf32> to vector<256x3xf32>
    %5 = arith.truncf %4 : vector<256x3xf32> to vector<256x3xbf16>
    %c0_3 = arith.constant 0 : index
    %c0_4 = arith.constant 0 : index
    %6 = vector.load %arg3[%c0_3, %c0_4] : memref<3x64xbf16, #tpu.memory_space<vmem>>, vector<3x64xbf16>
    %cst = arith.constant dense<0.000000e+00> : vector<256x64xf32>
    %7 = tpu.matmul %5, %6, %cst {dimension_numbers = #tpu.dot_dimension_numbers<[1], [0], [0], [1], [0, 0, 1, 1], [], []>} : vector<256x3xbf16>, vector<3x64xbf16>, vector<256x64xf32> -> vector<256x64xf32>
    %c0_5 = arith.constant 0 : index
    %c0_6 = arith.constant 0 : index
    %8 = vector.load %arg4[%c0_5, %c0_6] : memref<1x64xf32, #tpu.memory_space<vmem>>, vector<1x64xf32>
    %9 = vector.broadcast %8 : vector<1x64xf32> to vector<256x64xf32>
    %10 = arith.addf %7, %9 : vector<256x64xf32>
    %cst_7 = arith.constant 0.000000e+00 : f32
    %11 = vector.broadcast %cst_7 : f32 to vector<256x64xf32>
    %12 = arith.maximumf %10, %11 : vector<256x64xf32>
    %13 = arith.truncf %12 : vector<256x64xf32> to vector<256x64xbf16>
    %c0_8 = arith.constant 0 : index
    %c0_9 = arith.constant 0 : index
    %14 = vector.load %arg5[%c0_8, %c0_9] : memref<64x1024xbf16, #tpu.memory_space<vmem>>, vector<64x1024xbf16>
    %cst_10 = arith.constant dense<0.000000e+00> : vector<256x1024xf32>
    %15 = tpu.matmul %13, %14, %cst_10 {dimension_numbers = #tpu.dot_dimension_numbers<[1], [0], [0], [1], [0, 0, 1, 1], [], []>} : vector<256x64xbf16>, vector<64x1024xbf16>, vector<256x1024xf32> -> vector<256x1024xf32>
    %16 = vector.shape_cast %15 : vector<256x1024xf32> to vector<2x128x1024xf32>
    %cst_11 = arith.constant dense<0xFF800000> : vector<2x1024xf32>
    %17 = vector.multi_reduction <maximumf>, %16, %cst_11 [1] : vector<2x128x1024xf32> to vector<2x1024xf32>
    %c0_12 = arith.constant 0 : index
    %c0_13 = arith.constant 0 : index
    %18 = vector.load %arg7[%c0_12, %c0_13] : memref<2x1024xf32, #tpu.memory_space<vmem>>, vector<2x1024xf32>
    %19 = arith.maximumf %18, %17 : vector<2x1024xf32>
    %c0_14 = arith.constant 0 : index
    %c0_15 = arith.constant 0 : index
    %20 = vector.load %arg7[%c0_14, %c0_15] : memref<2x1024xf32, #tpu.memory_space<vmem>>, vector<2x1024xf32>
    tpu.vector_store %arg7[%c0_14, %c0_15], %19 {strides = array<i32>} : memref<2x1024xf32, #tpu.memory_space<vmem>>, vector<2x1024xf32>,
    %c1_i32 = arith.constant 1 : i32
    %21 = arith.cmpi eq, %arg1, %c1_i32 : i32
    %22 = arith.extui %21 : i1 to i32
    %c0_i32_16 = arith.constant 0 : i32
    %23 = arith.cmpi ne, %22, %c0_i32_16 : i32
    scf.if %23 {
      %c0_17 = arith.constant 0 : index
      %c0_18 = arith.constant 0 : index
      %24 = vector.load %arg7[%c0_17, %c0_18] : memref<2x1024xf32, #tpu.memory_space<vmem>>, vector<2x1024xf32>
      %c0_19 = arith.constant 0 : index
      %c0_20 = arith.constant 0 : index
      %25 = vector.load %arg6[%c0_19, %c0_20] : memref<1x1024xf32, #tpu.memory_space<vmem>>, vector<1x1024xf32>
      %26 = vector.broadcast %25 : vector<1x1024xf32> to vector<2x1024xf32>
      %27 = arith.addf %24, %26 : vector<2x1024xf32>
      %cst_21 = arith.constant 0.000000e+00 : f32
      %28 = vector.broadcast %cst_21 : f32 to vector<2x1024xf32>
      %29 = arith.maximumf %27, %28 : vector<2x1024xf32>
      %c0_22 = arith.constant 0 : index
      %c0_23 = arith.constant 0 : index
      %30 = vector.load %arg7[%c0_22, %c0_23] : memref<2x1024xf32, #tpu.memory_space<vmem>>, vector<2x1024xf32>
      tpu.vector_store %arg7[%c0_22, %c0_23], %29 {strides = array<i32>} : memref<2x1024xf32, #tpu.memory_space<vmem>>, vector<2x1024xf32>,
    } else {
    }
    return
  }
  func.func @transform_0(%arg0: i32, %arg1: i32) -> (i32, i32, i32) {
    %c0_i32 = arith.constant 0 : i32
    %c0_i32_0 = arith.constant 0 : i32
    return %arg0, %arg1, %c0_i32 : i32, i32, i32
  }
  func.func @transform_1(%arg0: i32, %arg1: i32) -> (i32, i32) {
    %c0_i32 = arith.constant 0 : i32
    %c0_i32_0 = arith.constant 0 : i32
    %c0_i32_1 = arith.constant 0 : i32
    return %c0_i32, %c0_i32_0 : i32, i32
  }
  func.func @transform_2(%arg0: i32, %arg1: i32) -> (i32, i32) {
    %c0_i32 = arith.constant 0 : i32
    %c0_i32_0 = arith.constant 0 : i32
    %c0_i32_1 = arith.constant 0 : i32
    return %c0_i32, %c0_i32_0 : i32, i32
  }
  func.func @transform_3(%arg0: i32, %arg1: i32) -> (i32, i32) {
    %c0_i32 = arith.constant 0 : i32
    %c0_i32_0 = arith.constant 0 : i32
    %c0_i32_1 = arith.constant 0 : i32
    return %c0_i32, %c0_i32_0 : i32, i32
  }
  func.func @transform_4(%arg0: i32, %arg1: i32) -> (i32, i32) {
    %c0_i32 = arith.constant 0 : i32
    %c0_i32_0 = arith.constant 0 : i32
    %c0_i32_1 = arith.constant 0 : i32
    return %c0_i32, %c0_i32_0 : i32, i32
  }
  func.func @transform_5(%arg0: i32, %arg1: i32) -> (i32, i32) {
    %c0_i32 = arith.constant 0 : i32
    %c0_i32_0 = arith.constant 0 : i32
    return %arg0, %c0_i32 : i32, i32
  }
}

</mosaic_0001>

<bundles_post_ra>
// kernel: pointnetfeat_forward.1
= control target key start
LH: loop header
LB: loop body
LE: loop exit
PB: predicated region body
PF: predicated region fallthrough
CT: control target
= control target key end

     0   :  { %10 = vsyncpa [#allocation4], 0  ;;  %s2670_s18 = smov 0   ;;  %s2672_s19 = smov 0   ;;  %s3310_s0 = inlined_call_operand.vmem [shape: f32[2,256,3], index: 0, kind: input, shape index: {}]   ;;  %s3311_s1 = inlined_call_operand.vmem [shape: bf16[3,64], index: 1, kind: input, shape index: {}]   ;;  %s3312_s2 = inlined_call_operand.vmem [shape: f32[1,64], index: 2, kind: input, shape index: {}]   ;;  %s3313_s3 = inlined_call_operand.vmem [shape: bf16[64,1024], index: 3, kind: input, shape index: {}]   ;;  %s3314_s4 = inlined_call_operand.vmem [shape: f32[1,1024], index: 4, kind: input, shape index: {}]   ;;  %s3315_s5 = inlined_call_operand.hbm [shape: f32[2,1024], index: 5, kind: output, shape index: {}]  }
   0x1   :  { %s2674_s20 = smov 0   ;;  %s2676_s21 = smov 0  }
   0x2   :  { %s2678_s22 = smov 0  }
   0x3 LB: > { %s2335_s23 = sadd.s32 4294967295, %s2633_s22   ;;  %s25_s24 = sadd.s32 1, %s2629_s21  ;;  %s2633_s22 = sphi %s2678_s22, %s16_s22   ;;  %s2629_s21 = sphi %s2676_s21, %s3320_s21   ;;  %s2625_s20 = sphi %s2674_s20, %s3319_s20   ;;  %s2621_s19 = sphi %s2672_s19, %s3318_s19   ;;  %s2617_s18 = sphi %s2670_s18, %s3317_s18  }
   0x4   : > { %p26_p0 = scmp.ge.s32.totalorder %s25_s24, 2  ;;  %p44_p1 = scmp.ne.s32.totalorder %s2621_s19, %s2617_s18 }
   0x5   : > { %p45_p2 = scmp.eq.s32.totalorder %s2633_s22, 0  ;;  %s37_s26 = sadd.s32 1, %s2621_s19 }
   0x6   : > { %s3322_s24 = smov (%p26_p0, %s25_s24), 0  ;;  %p2337_p5 = scmp.ge.s32.totalorder %s2633_s22, 2 }
   0x7   : > { %p46_p3 = por %p45_p2, %p44_p1  ;;  %s33_s25 = ssub.s32 %s2629_s21, %s3322_s24 }
   0x8   : > { %p35_p4 = scmp.eq.s32.totalorder %s33_s25, 0  ;;  %192 = sbr.rel (%p2337_p5) target bundleno = 33 (0x21), region = 32 }
   0xa   : > { %s2706_s27 = scalar_select %p35_p4, %s2621_s19, %s37_s26  }
   0xd   : > { %195 = sbr.rel (!%p46_p3) target bundleno = 33 (0x21), region = 36  ;;  %s197_s28 = sand.u32 (%p46_p3), 1, %s2621_s19  }
   0xe   : > { %s2462_s29 = sshll.u32 (%p46_p3), %s2629_s21, 7  ;;  %s2338_s30 = sshll.u32 (%p46_p3), %s197_s28, 8 }
   0xf   : > { %s2714_s8 = scalar_lea.vmem (%p46_p3), %s3310_s0, %s2462_s29  ;;  %s2719_s9 = scalar_lea.vmem (%p46_p3), [#allocation2], %s2338_s30 }
  0x10   : > { %v296_v0 = vld [vmem:[%s2714_s8] sm:$0xff] (%p46_p3)  ;;  %v298_v1 = vld [vmem:[%s2714_s8 + $0x8] sm:$0xff] (%p46_p3)  ;;  %v300_v2 = vld [vmem:[%s2714_s8 + $0x10] sm:$0xff] (%p46_p3) }
  0x11   : > { %297 = vst [vmem:[%s2719_s9] sm:$0xff] (%p46_p3), %v296_v0  ;;  %299 = vst [vmem:[%s2719_s9 + $0x8] sm:$0xff] (%p46_p3), %v298_v1  ;;  %v302_v3 = vld [vmem:[%s2714_s8 + $0x18] sm:$0xff] (%p46_p3)  ;;  %v304_v4 = vld [vmem:[%s2714_s8 + $0x20] sm:$0xff] (%p46_p3) }
  0x12   : > { %301 = vst [vmem:[%s2719_s9 + $0x10] sm:$0xff] %v300_v2  ;;  %v306_v5 = vld [vmem:[%s2714_s8 + $0x28] sm:$0xff]  ;;  %303 = vst [vmem:[%s2719_s9 + $0x18] sm:$0xff] %v302_v3  ;;  %v308_v6 = vld [vmem:[%s2714_s8 + $0x30] sm:$0xff] }
  0x13   : > { %305 = vst [vmem:[%s2719_s9 + $0x20] sm:$0xff] %v304_v4  ;;  %307 = vst [vmem:[%s2719_s9 + $0x28] sm:$0xff] %v306_v5  ;;  %v310_v7 = vld [vmem:[%s2714_s8 + $0x38] sm:$0xff]  ;;  %v312_v8 = vld [vmem:[%s2714_s8 + $0x40] sm:$0xff] }
  0x14   : > { %309 = vst [vmem:[%s2719_s9 + $0x30] sm:$0xff] %v308_v6  ;;  %311 = vst [vmem:[%s2719_s9 + $0x38] sm:$0xff] %v310_v7  ;;  %v314_v9 = vld [vmem:[%s2714_s8 + $0x48] sm:$0xff]  ;;  %v316_v10 = vld [vmem:[%s2714_s8 + $0x50] sm:$0xff] }
  0x15   : > { %313 = vst [vmem:[%s2719_s9 + $0x40] sm:$0xff] %v312_v8  ;;  %v318_v11 = vld [vmem:[%s2714_s8 + $0x58] sm:$0xff]  ;;  %315 = vst [vmem:[%s2719_s9 + $0x48] sm:$0xff] %v314_v9  ;;  %v320_v12 = vld [vmem:[%s2714_s8 + $0x60] sm:$0xff] }
  0x16   : > { %317 = vst [vmem:[%s2719_s9 + $0x50] sm:$0xff] %v316_v10  ;;  %319 = vst [vmem:[%s2719_s9 + $0x58] sm:$0xff] %v318_v11  ;;  %v322_v13 = vld [vmem:[%s2714_s8 + $0x68] sm:$0xff]  ;;  %v324_v14 = vld [vmem:[%s2714_s8 + $0x70] sm:$0xff] }
  0x17   : > { %321 = vst [vmem:[%s2719_s9 + $0x60] sm:$0xff] %v320_v12  ;;  %323 = vst [vmem:[%s2719_s9 + $0x68] sm:$0xff] %v322_v13  ;;  %v326_v15 = vld [vmem:[%s2714_s8 + $0x78] sm:$0xff]  ;;  %v328_v16 = vld [vmem:[%s2714_s8 + $0x100] sm:$0xff] }
  0x18   : > { %325 = vst [vmem:[%s2719_s9 + $0x70] sm:$0xff] %v324_v14  ;;  %v330_v17 = vld [vmem:[%s2714_s8 + $0x108] sm:$0xff]  ;;  %327 = vst [vmem:[%s2719_s9 + $0x78] sm:$0xff] %v326_v15  ;;  %v332_v18 = vld [vmem:[%s2714_s8 + $0x110] sm:$0xff] }
  0x19   : > { %329 = vst [vmem:[%s2719_s9 + $0x80] sm:$0xff] %v328_v16  ;;  %331 = vst [vmem:[%s2719_s9 + $0x88] sm:$0xff] %v330_v17  ;;  %v334_v19 = vld [vmem:[%s2714_s8 + $0x118] sm:$0xff]  ;;  %v336_v20 = vld [vmem:[%s2714_s8 + $0x120] sm:$0xff] }
  0x1a   : > { %333 = vst [vmem:[%s2719_s9 + $0x90] sm:$0xff] %v332_v18  ;;  %335 = vst [vmem:[%s2719_s9 + $0x98] sm:$0xff] %v334_v19  ;;  %v338_v21 = vld [vmem:[%s2714_s8 + $0x128] sm:$0xff]  ;;  %v340_v22 = vld [vmem:[%s2714_s8 + $0x130] sm:$0xff] }
  0x1b   : > { %337 = vst [vmem:[%s2719_s9 + $0xa0] sm:$0xff] %v336_v20  ;;  %v342_v23 = vld [vmem:[%s2714_s8 + $0x138] sm:$0xff]  ;;  %339 = vst [vmem:[%s2719_s9 + $0xa8] sm:$0xff] %v338_v21  ;;  %v344_v24 = vld [vmem:[%s2714_s8 + $0x140] sm:$0xff] }
  0x1c   : > { %341 = vst [vmem:[%s2719_s9 + $0xb0] sm:$0xff] %v340_v22  ;;  %343 = vst [vmem:[%s2719_s9 + $0xb8] sm:$0xff] %v342_v23  ;;  %v346_v25 = vld [vmem:[%s2714_s8 + $0x148] sm:$0xff]  ;;  %v348_v26 = vld [vmem:[%s2714_s8 + $0x150] sm:$0xff] }
  0x1d   : > { %345 = vst [vmem:[%s2719_s9 + $0xc0] sm:$0xff] %v344_v24  ;;  %347 = vst [vmem:[%s2719_s9 + $0xc8] sm:$0xff] %v346_v25  ;;  %v350_v27 = vld [vmem:[%s2714_s8 + $0x158] sm:$0xff]  ;;  %v352_v28 = vld [vmem:[%s2714_s8 + $0x160] sm:$0xff] }
  0x1e   : > { %349 = vst [vmem:[%s2719_s9 + $0xd0] sm:$0xff] %v348_v26  ;;  %v354_v29 = vld [vmem:[%s2714_s8 + $0x168] sm:$0xff]  ;;  %351 = vst [vmem:[%s2719_s9 + $0xd8] sm:$0xff] %v350_v27  ;;  %v356_v30 = vld [vmem:[%s2714_s8 + $0x170] sm:$0xff] }
  0x1f   : > { %353 = vst [vmem:[%s2719_s9 + $0xe0] sm:$0xff] %v352_v28  ;;  %355 = vst [vmem:[%s2719_s9 + $0xe8] sm:$0xff] %v354_v29  ;;  %v358_v31 = vld [vmem:[%s2714_s8 + $0x178] sm:$0xff] }
  0x20   : > { %357 = vst [vmem:[%s2719_s9 + $0xf0] sm:$0xff] %v356_v30  ;;  %359 = vst [vmem:[%s2719_s9 + $0xf8] sm:$0xff] %v358_v31 }
  0x21 PF: > { %p2341_p6 = scmp.ge.s32.totalorder %s2633_s22, 1  ;;  %p364_p7 = scmp.lt.s32.totalorder %s2633_s22, 3 }
  0x23   : > { %p365_p8 = pnand %p2341_p6, %p364_p7 }
  0x24   : > { %s371_s10 = sand.u32 (!%p365_p8), 1, %s2617_s18   ;;  %p2343_p9 = scmp.ne.s32.totalorder (!%p365_p8), %s2625_s20, 0 }
  0x25   : > { %368 = sbr.rel (%p365_p8) target bundleno = 770 (0x302), region = 74  ;;  %s2342_s11 = sshll.u32 (!%p365_p8), %s371_s10, 8 }
  0x26   : > { %s2785_s12 = scalar_lea.vmem (!%p365_p8), [#allocation2], %s2342_s11 }
  0x2a   : > { %399 = sbr.rel (%p2343_p9) target bundleno = 49 (0x31), region = 82 }
  0x2f   : > { %v2635_v32 = vmov -inf  }
  0x30   : > { %400 = vst [vmem:[#allocation3] sm:$0xff] %v2635_v32  ;;  %401 = vst [vmem:[#allocation3 + $0x8] sm:$0xff] %v2635_v32 }
  0x31 PF: > { %v450_v33 = vld [vmem:[%s3311_s1] sm:$0x3]  ;;  %vm507_vm0 = vcmask 1040384   ;;  %vm508_vm1 = vcmask 1041408   ;;  %v2636_v35 = vmov 65535   ;;  %v403_v37 = vld [vmem:[%s2785_s12 + $0x8] sm:$0xff] }
  0x32   : > { %v402_v34 = vld [vmem:[%s2785_s12] sm:$0xff]  ;;  %v509_v36 = vsel %vm507_vm0, 4294967295, %v2636_v35  ;;  %vm458_vm2 = vcmask 23552   ;;  %v404_v40 = vld [vmem:[%s2785_s12 + $0x10] sm:$0xff]  ;;  %v405_v41 = vld [vmem:[%s2785_s12 + $0x18] sm:$0xff]  ;;  %vm915_vm3 = vcmask 523264  }
  0x33   : > { %v510_v38 = vsel %vm508_vm1, %v509_v36, 0  ;;  %v434_v39 = vpack.c.bf16 %v403_v37, %v402_v34  ;;  %v406_v43 = vld [vmem:[%s2785_s12 + $0x20] sm:$0xff]  ;;  %v407_v44 = vld [vmem:[%s2785_s12 + $0x28] sm:$0xff]  ;;  %v435_v45 = vpack.c.bf16 %v405_v41, %v404_v40  ;;  %v420_v49 = vld [vmem:[%s2785_s12 + $0x90] sm:$0xff]  ;;  %vm2163_vm4 = vcmask 1041409   ;;  %p2457_p10 = scmp.ne.s32.totalorder %s2625_s20, 1 }
  0x34   : > { %v512_v42 = vand.u32 %v510_v38, %v450_v33  ;;  %v436_v46 = vpack.c.bf16 %v407_v44, %v406_v43  ;;  %v418_v47 = vld [vmem:[%s2785_s12 + $0x80] sm:$0xff]  ;;  %v419_v48 = vld [vmem:[%s2785_s12 + $0x88] sm:$0xff]  ;;  %v421_v51 = vld [vmem:[%s2785_s12 + $0x98] sm:$0xff]  ;;  %vm2165_vm5 = vcmask 1043459   ;;  %vm2167_vm6 = vcmask 1045509  }
  0x35   : > { %2482 = vmatprep.mubr.msk.bf16.mxu0 %vm458_vm2, %v434_v39  ;;  %v442_v50 = vpack.c.bf16 %v419_v48, %v418_v47  ;;  %v422_v52 = vld [vmem:[%s2785_s12 + $0xa0] sm:$0xff]  ;;  %v423_v53 = vld [vmem:[%s2785_s12 + $0xa8] sm:$0xff]  ;;  %v408_v54 = vld [vmem:[%s2785_s12 + $0x30] sm:$0xff]  ;;  %v443_v55 = vpack.c.bf16 %v421_v51, %v420_v49  ;;  %vm2169_vm7 = vcmask 1047559  }
  0x36   : > { %2480 = vmatprep.subr.bf16.mxu0 %v512_v42  ;;  %2514 = vmatprep.subr.bf16.mxu1 %v512_v42  ;;  %v444_v56 = vpack.c.bf16 %v423_v53, %v422_v52  ;;  %v409_v57 = vld [vmem:[%s2785_s12 + $0x38] sm:$0xff]  ;;  %v410_v58 = vld [vmem:[%s2785_s12 + $0x40] sm:$0xff]  ;;  %v411_v59 = vld [vmem:[%s2785_s12 + $0x48] sm:$0xff] }
  0x37   : > { %2481 = vmatpush3.bf16.msra.mxu0 %v512_v42  ;;  %2515 = vmatpush3.bf16.msra.mxu1 %v512_v42  ;;  %v424_v60 = vld [vmem:[%s2785_s12 + $0xb0] sm:$0xff]  ;;  %v425_v61 = vld [vmem:[%s2785_s12 + $0xb8] sm:$0xff]  ;;  %v426_v62 = vld [vmem:[%s2785_s12 + $0xc0] sm:$0xff]  ;;  %v437_v7 = vpack.c.bf16 %v409_v57, %v408_v54  ;;  %v438_v13 = vpack.c.bf16 %v411_v59, %v410_v58  ;;  %v2637_v54 = vmov 0  }
  0x38   : > { %2498 = vmatprep.mubr.msk.bf16.mxu1 %vm458_vm2, %v442_v50  ;;  %v427_v63 = vld [vmem:[%s2785_s12 + $0xc8] sm:$0xff]  ;;  %v747_v0 = vld [vmem:[%s3313_s3 + $0xc0] sm:$0xff]  ;;  %v445_v14 = vpack.c.bf16 %v425_v61, %v424_v60  ;;  %v412_v26 = vld [vmem:[%s2785_s12 + $0x50] sm:$0xff] }
  0x39   : > { %v751_v1 = vld [vmem:[%s3313_s3 + $0xe0] sm:$0xff]  ;;  %v748_v4 = vld [vmem:[%s3313_s3 + $0xc8] sm:$0xff]  ;;  %v446_v20 = vpack.c.bf16 %v427_v63, %v426_v62  ;;  %v413_v27 = vld [vmem:[%s2785_s12 + $0x58] sm:$0xff] }
  0x3a   : > { %2483 = vmatmul.mubr.msk.bf16.vlgmr.msra.gmra.mxu0 %vm458_vm2, %v435_v45  ;;  %2499 = vmatmul.mubr.msk.bf16.vlgmr.msra.gmra.mxu1 %vm458_vm2, %v443_v55  ;;  %v2385_v2 = vcombine.low %v747_v0, %v751_v1  ;;  %v2386_v3 = vcombine.high %v747_v0, %v751_v1  ;;  %v752_v5 = vld [vmem:[%s3313_s3 + $0xe8] sm:$0xff]  ;;  %v739_v6 = vld [vmem:[%s3313_s3 + $0x80] sm:$0xff]  ;;  %v428_v30 = vld [vmem:[%s2785_s12 + $0xd0] sm:$0xff]  ;;  %v439_v36 = vpack.c.bf16 %v413_v27, %v412_v26 }
  0x3b   : > { %2486 = vmatprep.mubr.msk.bf16.mxu0 %vm458_vm2, %v436_v46  ;;  %2502 = vmatprep.mubr.msk.bf16.mxu1 %vm458_vm2, %v444_v56  ;;  %v2387_v8 = vcombine.low %v748_v4, %v752_v5  ;;  %v2388_v9 = vcombine.high %v748_v4, %v752_v5  ;;  %v743_v10 = vld [vmem:[%s3313_s3 + $0xa0] sm:$0xff]  ;;  %v740_v11 = vld [vmem:[%s3313_s3 + $0x88] sm:$0xff]  ;;  %v429_v31 = vld [vmem:[%s2785_s12 + $0xd8] sm:$0xff] }
  0x3c   : > { %v744_v12 = vld [vmem:[%s3313_s3 + $0xa8] sm:$0xff]  ;;  %972 = vmatprep.subr.bf16.mxu1 %v2386_v3  ;;  %v2378_v15 = vcombine.high %v739_v6, %v743_v10  ;;  %v731_v17 = vld [vmem:[%s3313_s3 + $0x40] sm:$0xff]  ;;  %v2377_v21 = vcombine.low %v739_v6, %v743_v10  ;;  %v447_v38 = vpack.c.bf16 %v429_v31, %v428_v30  ;;  %v416_v40 = vld [vmem:[%s2785_s12 + $0x70] sm:$0xff] }
  0x3d   : > { %v2380_v16 = vcombine.high %v740_v11, %v744_v12  ;;  %v735_v18 = vld [vmem:[%s3313_s3 + $0x60] sm:$0xff]  ;;  %v732_v19 = vld [vmem:[%s3313_s3 + $0x48] sm:$0xff]  ;;  %1165 = vmatprep.subr.bf16.mxu0 %v2388_v9  ;;  %973 = vmatpush1.bf16.msra.mxu1 %v2385_v2  ;;  %v2379_v23 = vcombine.low %v740_v11, %v744_v12  ;;  %v417_v41 = vld [vmem:[%s2785_s12 + $0x78] sm:$0xff] }
  0x3e   : > { %v736_v22 = vld [vmem:[%s3313_s3 + $0x68] sm:$0xff]  ;;  %1166 = vmatpush1.bf16.msra.mxu0 %v2387_v8  ;;  %974 = vmatprep.subr.bf16.mxu1 %v2378_v15  ;;  %v2370_v24 = vcombine.high %v731_v17, %v735_v18  ;;  %v414_v28 = vld [vmem:[%s2785_s12 + $0x60] sm:$0xff]  ;;  %v2369_v32 = vcombine.low %v731_v17, %v735_v18  ;;  %v432_v42 = vld [vmem:[%s2785_s12 + $0xf0] sm:$0xff]  ;;  %v441_v44 = vpack.c.bf16 %v417_v41, %v416_v40 }
  0x3f   : > { %1167 = vmatprep.subr.bf16.mxu0 %v2380_v16  ;;  %v2372_v25 = vcombine.high %v732_v19, %v736_v22  ;;  %v415_v29 = vld [vmem:[%s2785_s12 + $0x68] sm:$0xff]  ;;  %v430_v33 = vld [vmem:[%s2785_s12 + $0xe0] sm:$0xff]  ;;  %v2371_v35 = vcombine.low %v732_v19, %v736_v22  ;;  %v433_v43 = vld [vmem:[%s2785_s12 + $0xf8] sm:$0xff] }
  0x40   : > { %v431_v34 = vld [vmem:[%s2785_s12 + $0xe8] sm:$0xff]  ;;  %v440_v37 = vpack.c.bf16 %v415_v29, %v414_v28  ;;  %v449_v45 = vpack.c.bf16 %v433_v43, %v432_v42  ;;  %v723_v46 = vld [vmem:[%s3313_s3] sm:$0xff]  ;;  %v749_v55 = vld [vmem:[%s3313_s3 + $0xd0] sm:$0xff] }
  0x41   : > { %975 = vmatpush1.bf16.msra.mxu1 %v2377_v21  ;;  %v448_v39 = vpack.c.bf16 %v431_v34, %v430_v33  ;;  %v727_v47 = vld [vmem:[%s3313_s3 + $0x20] sm:$0xff]  ;;  %v724_v48 = vld [vmem:[%s3313_s3 + $0x8] sm:$0xff]  ;;  %v753_v56 = vld [vmem:[%s3313_s3 + $0xf0] sm:$0xff] }
  0x42   : > { %2487 = vmatmul.mubr.msk.bf16.gmra.mxu0 %vm458_vm2, %v437_v7  ;;  %2503 = vmatmul.mubr.msk.bf16.gmra.mxu1 %vm458_vm2, %v445_v14  ;;  %v2362_v49 = vcombine.high %v723_v46, %v727_v47  ;;  %v728_v50 = vld [vmem:[%s3313_s3 + $0x28] sm:$0xff]  ;;  %v2361_v51 = vcombine.low %v723_v46, %v727_v47  ;;  %v750_v57 = vld [vmem:[%s3313_s3 + $0xd8] sm:$0xff]  ;;  %v2389_v58 = vcombine.low %v749_v55, %v753_v56  ;;  %v2904_v1 = vld [vmem:[%s3312_s2] ss:$0 sm:$0xff] }
  0x43   : > { %2490 = vmatprep.mubr.msk.bf16.mxu0 %vm458_vm2, %v438_v13  ;;  %2506 = vmatprep.mubr.msk.bf16.mxu1 %vm458_vm2, %v446_v20  ;;  %v2363_v52 = vcombine.low %v724_v48, %v728_v50  ;;  %v2364_v53 = vcombine.high %v724_v48, %v728_v50  ;;  %v2390_v59 = vcombine.high %v749_v55, %v753_v56  ;;  %v754_v60 = vld [vmem:[%s3313_s3 + $0xf8] sm:$0xff]  ;;  %v741_v7 = vld [vmem:[%s3313_s3 + $0x90] sm:$0xff] }
  0x44   : > { %1168 = vmatpush1.bf16.msra.mxu0 %v2379_v23  ;;  %976 = vmatprep.subr.bf16.mxu1 %v2370_v24  ;;  %v2391_v61 = vcombine.low %v750_v57, %v754_v60  ;;  %v2392_v62 = vcombine.high %v750_v57, %v754_v60  ;;  %v745_v10 = vld [vmem:[%s3313_s3 + $0xb0] sm:$0xff]  ;;  %v742_v11 = vld [vmem:[%s3313_s3 + $0x98] sm:$0xff] }
  0x45   : > { %1169 = vmatprep.subr.bf16.mxu0 %v2372_v25  ;;  %977 = vmatpush1.bf16.msra.mxu1 %v2369_v32  ;;  %v746_v12 = vld [vmem:[%s3313_s3 + $0xb8] sm:$0xff]  ;;  %v733_v16 = vld [vmem:[%s3313_s3 + $0x50] sm:$0xff]  ;;  %v2382_v18 = vcombine.high %v741_v7, %v745_v10  ;;  %v2381_v24 = vcombine.low %v741_v7, %v745_v10 }
  0x46   : > { %978 = vmatprep.subr.bf16.mxu1 %v2362_v49  ;;  %v2384_v19 = vcombine.high %v742_v11, %v746_v12  ;;  %v737_v20 = vld [vmem:[%s3313_s3 + $0x70] sm:$0xff]  ;;  %v734_v21 = vld [vmem:[%s3313_s3 + $0x58] sm:$0xff]  ;;  %v2383_v25 = vcombine.low %v742_v11, %v746_v12 }
  0x47   : > { %v738_v22 = vld [vmem:[%s3313_s3 + $0x78] sm:$0xff]  ;;  %v2374_v27 = vcombine.high %v733_v16, %v737_v20  ;;  %v725_v30 = vld [vmem:[%s3313_s3 + $0x10] sm:$0xff] }
  0x48   : > { %1170 = vmatpush1.bf16.msra.mxu0 %v2371_v35  ;;  %v2376_v28 = vcombine.high %v734_v21, %v738_v22  ;;  %v729_v32 = vld [vmem:[%s3313_s3 + $0x30] sm:$0xff]  ;;  %v726_v33 = vld [vmem:[%s3313_s3 + $0x18] sm:$0xff]  ;;  %v2373_v35 = vcombine.low %v733_v16, %v737_v20 }
  0x49   : > { %1171 = vmatprep.subr.bf16.mxu0 %v2364_v53  ;;  %979 = vmatpush1.bf16.msra.mxu1 %v2361_v51  ;;  %v730_v34 = vld [vmem:[%s3313_s3 + $0x38] sm:$0xff]  ;;  %v2366_v41 = vcombine.high %v725_v30, %v729_v32 }
  0x4a   : > { %2491 = vmatmul.mubr.msk.bf16.gmra.mxu0 %vm458_vm2, %v439_v36  ;;  %2507 = vmatmul.mubr.msk.bf16.gmra.mxu1 %vm458_vm2, %v447_v38  ;;  %v2375_v36 = vcombine.low %v734_v21, %v738_v22  ;;  %v2368_v42 = vcombine.high %v726_v33, %v730_v34  ;;  %v2367_v46 = vcombine.low %v726_v33, %v730_v34 }
  0x4b   : > { %2494 = vmatprep.mubr.msk.bf16.mxu0 %vm458_vm2, %v440_v37  ;;  %2510 = vmatprep.mubr.msk.bf16.mxu1 %vm458_vm2, %v448_v39 }
  0x4c   : > { %1172 = vmatpush1.bf16.msra.mxu0 %v2363_v52  ;;  %1358 = vmatprep.subr.bf16.mxu1 %v2390_v59 }
  0x4d   : > { %1551 = vmatprep.subr.bf16.mxu0 %v2392_v62 }
  0x52   : > { %2495 = vmatmul.mubr.msk.bf16.gmra.mxu0 %vm458_vm2, %v441_v44  ;;  %2511 = vmatmul.mubr.msk.bf16.gmra.mxu1 %vm458_vm2, %v449_v45  ;;  %v2365_v45 = vcombine.low %v725_v30, %v729_v32 }
  0x53   : > { %996 = vmatprep.mubr.bf16.mxu1 %v2637_v54  ;;  %1189 = vmatprep.mubr.bf16.mxu0 %v2637_v54 }
  0xfa   : > { %v2484_v63 = vpop.f32.mrf.mxu0  ;;  %v2500_v10 = vpop.f32.mrf.mxu1 }
  0xfb   : > { %v557_v23 = vadd.f32 %v2484_v63, %v2904_v1 }
  0xfc   : > { %v548_v0 = vpop.f32.mrf.mxu0 }
  0xfd   : > { %v549_v3 = vadd.f32 %v2904_v1, %v548_v0  ;;  %v677_v31 = vmax.f32 %v557_v23, 0.0 }
  0xfe   : > { %v2485_v2 = vpop.f32.mrf.mxu0 }
  0xff   : > { %v675_v8 = vmax.f32 %v549_v3, 0.0  ;;  %v560_v14 = vadd.f32 %v2485_v2, %v2904_v1 }
 0x100   : > { %v551_v4 = vpop.f32.mrf.mxu0 }
 0x101   : > { %v552_v5 = vadd.f32 %v2904_v1, %v551_v4  ;;  %v678_v26 = vmax.f32 %v560_v14, 0.0 }
 0x102   : > { %v2908_v6 = vpop.f32.mrf.mxu0 }
 0x103   : > { %v676_v9 = vmax.f32 %v552_v5, 0.0  ;;  %v2956_v37 = vpack.c.bf16 %v678_v26, %v677_v31  ;;  %v573_v48 = vadd.f32 %v2908_v6, %v2904_v1 }
 0x104   : > { %v564_v13 = vpop.f32.mrf.mxu0 }
 0x105   : > { %v2923_v15 = vpack.c.bf16 %v676_v9, %v675_v8  ;;  %v565_v38 = vadd.f32 %v2904_v1, %v564_v13  ;;  %v681_v52 = vmax.f32 %v573_v48, 0.0  ;;  %v612_v13 = vpop.f32.mrf.mxu1 }
 0x106   : > { %v2489_v17 = vpop.f32.mrf.mxu0  ;;  %v613_v23 = vadd.f32 %v2904_v1, %v612_v13 }
 0x107   : > { %2393 = vmatmul.mubr.msk.bf16.vlgmr.msra.gmra.mxu1 %vm915_vm3, %v2923_v15  ;;  %2409 = vmatmul.mubr.msk.bf16.vlgmr.msra.gmra.mxu0 %vm915_vm3, %v2923_v15  ;;  %v679_v43 = vmax.f32 %v565_v38, 0.0  ;;  %v576_v49 = vadd.f32 %v2489_v17, %v2904_v1 }
 0x108   : > { %1359 = vmatpush1.bf16.msra.mxu1 %v2389_v58  ;;  %1552 = vmatpush1.bf16.msra.mxu0 %v2391_v61  ;;  %v567_v29 = vpop.f32.mrf.mxu0  ;;  %v691_v26 = vmax.f32 %v613_v23, 0.0 }
 0x109   : > { %1006 = vmatprep.mubr.bf16.mxu1 %v2637_v54  ;;  %1199 = vmatprep.mubr.bf16.mxu0 %v2637_v54  ;;  %v568_v39 = vadd.f32 %v2904_v1, %v567_v29  ;;  %v682_v53 = vmax.f32 %v576_v49, 0.0  ;;  %v621_v29 = vadd.f32 %v2500_v10, %v2904_v1 }
 0x10a   : > { %1360 = vmatprep.subr.bf16.mxu1 %v2382_v18  ;;  %1553 = vmatprep.subr.bf16.mxu0 %v2384_v19  ;;  %v2492_v40 = vpop.f32.mrf.mxu0  ;;  %v2501_v18 = vpop.f32.mrf.mxu1 }
 0x10b   : > { %v680_v44 = vmax.f32 %v568_v39, 0.0  ;;  %v2977_v56 = vpack.c.bf16 %v682_v53, %v681_v52  ;;  %v589_v63 = vadd.f32 %v2492_v40, %v2904_v1  ;;  %v624_v30 = vadd.f32 %v2501_v18, %v2904_v1 }
 0x10c   : > { %1361 = vmatpush1.bf16.msra.mxu1 %v2381_v24  ;;  %1554 = vmatpush1.bf16.msra.mxu0 %v2383_v25  ;;  %v580_v47 = vpop.f32.mrf.mxu0  ;;  %v615_v21 = vpop.f32.mrf.mxu1  ;;  %v693_v33 = vmax.f32 %v621_v29, 0.0 }
 0x10d   : > { %1362 = vmatprep.subr.bf16.mxu1 %v2374_v27  ;;  %1555 = vmatprep.subr.bf16.mxu0 %v2376_v28  ;;  %v2969_v50 = vpack.c.bf16 %v680_v44, %v679_v43  ;;  %v581_v57 = vadd.f32 %v2904_v1, %v580_v47  ;;  %v685_v4 = vmax.f32 %v589_v63, 0.0  ;;  %v616_v24 = vadd.f32 %v2904_v1, %v615_v21 }
 0x10e   : > { %v2493_v51 = vpop.f32.mrf.mxu0  ;;  %v2504_v25 = vpop.f32.mrf.mxu1  ;;  %v694_v34 = vmax.f32 %v624_v30, 0.0 }
 0x10f   : > { %2394 = vmatmul.mubr.msk.bf16.gmra.mxu1 %vm915_vm3, %v2956_v37  ;;  %2410 = vmatmul.mubr.msk.bf16.gmra.mxu0 %vm915_vm3, %v2956_v37  ;;  %v683_v60 = vmax.f32 %v581_v57, 0.0  ;;  %v592_v0 = vadd.f32 %v2493_v51, %v2904_v1  ;;  %v692_v27 = vmax.f32 %v616_v24, 0.0  ;;  %v637_v44 = vadd.f32 %v2504_v25, %v2904_v1 }
 0x110   : > { %1016 = vmatprep.mubr.bf16.mxu1 %v2637_v54  ;;  %1209 = vmatprep.mubr.bf16.mxu0 %v2637_v54  ;;  %v583_v55 = vpop.f32.mrf.mxu0  ;;  %v628_v28 = vpop.f32.mrf.mxu1 }
 0x111   : > { %1363 = vmatpush1.bf16.msra.mxu1 %v2373_v35  ;;  %1556 = vmatpush1.bf16.msra.mxu0 %v2375_v36  ;;  %v584_v58 = vadd.f32 %v2904_v1, %v583_v55  ;;  %v686_v5 = vmax.f32 %v592_v0, 0.0  ;;  %v3029_v31 = vpack.c.bf16 %v692_v27, %v691_v26  ;;  %v3037_v36 = vpack.c.bf16 %v694_v34, %v693_v33 }
 0x112   : > { %1364 = vmatprep.subr.bf16.mxu1 %v2366_v41  ;;  %1557 = vmatprep.subr.bf16.mxu0 %v2368_v42  ;;  %v2496_v59 = vpop.f32.mrf.mxu0  ;;  %v2505_v32 = vpop.f32.mrf.mxu1  ;;  %v629_v38 = vadd.f32 %v2904_v1, %v628_v28  ;;  %v697_v48 = vmax.f32 %v637_v44, 0.0 }
 0x113   : > { %v684_v61 = vmax.f32 %v584_v58, 0.0  ;;  %v2997_v7 = vpack.c.bf16 %v686_v5, %v685_v4  ;;  %v605_v14 = vadd.f32 %v2496_v59, %v2904_v1 }
 0x114   : > { %v596_v62 = vpop.f32.mrf.mxu0  ;;  %v631_v35 = vpop.f32.mrf.mxu1  ;;  %v695_v41 = vmax.f32 %v629_v38, 0.0 }
 0x115   : > { %1365 = vmatpush1.bf16.msra.mxu1 %v2365_v45  ;;  %1558 = vmatpush1.bf16.msra.mxu0 %v2367_v46  ;;  %v2989_v2 = vpack.c.bf16 %v684_v61, %v683_v60  ;;  %v597_v8 = vadd.f32 %v2904_v1, %v596_v62  ;;  %v689_v19 = vmax.f32 %v605_v14, 0.0  ;;  %v632_v39 = vadd.f32 %v2904_v1, %v631_v35 }
 0x116   : > { %v2497_v3 = vpop.f32.mrf.mxu0  ;;  %v2508_v40 = vpop.f32.mrf.mxu1  ;;  %v640_v45 = vadd.f32 %v2505_v32, %v2904_v1 }
 0x117   : > { %2395 = vmatmul.mubr.msk.bf16.gmra.mxu1 %vm915_vm3, %v2969_v50  ;;  %2411 = vmatmul.mubr.msk.bf16.gmra.mxu0 %vm915_vm3, %v2969_v50  ;;  %v687_v11 = vmax.f32 %v597_v8, 0.0  ;;  %v608_v16 = vadd.f32 %v2497_v3, %v2904_v1  ;;  %v696_v42 = vmax.f32 %v632_v39, 0.0  ;;  %v653_v61 = vadd.f32 %v2508_v40, %v2904_v1 }
 0x118   : > { %1026 = vmatprep.mubr.bf16.mxu1 %v2637_v54  ;;  %1219 = vmatprep.mubr.bf16.mxu0 %v2637_v54  ;;  %v599_v6 = vpop.f32.mrf.mxu0  ;;  %v644_v43 = vpop.f32.mrf.mxu1  ;;  %v698_v49 = vmax.f32 %v640_v45, 0.0 }
 0x119   : > { %v600_v9 = vadd.f32 %v2904_v1, %v599_v6  ;;  %v690_v20 = vmax.f32 %v608_v16, 0.0  ;;  %v3049_v46 = vpack.c.bf16 %v696_v42, %v695_v41  ;;  %v645_v53 = vadd.f32 %v2904_v1, %v644_v43 }
 0x11a   : > { %v2509_v47 = vpop.f32.mrf.mxu1  ;;  %v3057_v52 = vpack.c.bf16 %v698_v49, %v697_v48  ;;  %v701_v3 = vmax.f32 %v653_v61, 0.0 }
 0x11b   : > { %v688_v12 = vmax.f32 %v600_v9, 0.0  ;;  %v3017_v22 = vpack.c.bf16 %v690_v20, %v689_v19  ;;  %v699_v58 = vmax.f32 %v645_v53, 0.0  ;;  %v656_v62 = vadd.f32 %v2509_v47, %v2904_v1 }
 0x11c   : > { %v647_v51 = vpop.f32.mrf.mxu1 }
 0x11d   : > { %v3009_v17 = vpack.c.bf16 %v688_v12, %v687_v11  ;;  %v648_v55 = vadd.f32 %v2904_v1, %v647_v51  ;;  %v702_v4 = vmax.f32 %v656_v62, 0.0 }
 0x11e   : > { %v2512_v57 = vpop.f32.mrf.mxu1 }
 0x11f   : > { %2396 = vmatmul.mubr.msk.bf16.gmra.mxu1 %vm915_vm3, %v2977_v56  ;;  %2412 = vmatmul.mubr.msk.bf16.gmra.mxu0 %vm915_vm3, %v2977_v56  ;;  %v700_v59 = vmax.f32 %v648_v55, 0.0  ;;  %v3077_v6 = vpack.c.bf16 %v702_v4, %v701_v3  ;;  %v669_v12 = vadd.f32 %v2512_v57, %v2904_v1 }
 0x120   : > { %1036 = vmatprep.mubr.bf16.mxu1 %v2637_v54  ;;  %1229 = vmatprep.mubr.bf16.mxu0 %v2637_v54  ;;  %v660_v60 = vpop.f32.mrf.mxu1 }
 0x121   : > { %v3069_v63 = vpack.c.bf16 %v700_v59, %v699_v58  ;;  %v661_v8 = vadd.f32 %v2904_v1, %v660_v60  ;;  %v705_v16 = vmax.f32 %v669_v12, 0.0 }
 0x122   : > { %v2513_v0 = vpop.f32.mrf.mxu1 }
 0x123   : > { %v703_v10 = vmax.f32 %v661_v8, 0.0  ;;  %v672_v13 = vadd.f32 %v2513_v0, %v2904_v1 }
 0x124   : > { %v663_v5 = vpop.f32.mrf.mxu1 }
 0x125   : > { %v664_v9 = vadd.f32 %v2904_v1, %v663_v5  ;;  %v706_v18 = vmax.f32 %v672_v13, 0.0 }
 0x127   : > { %2397 = vmatmul.mubr.msk.bf16.gmra.mxu1 %vm915_vm3, %v2989_v2  ;;  %2413 = vmatmul.mubr.msk.bf16.gmra.mxu0 %vm915_vm3, %v2989_v2  ;;  %v704_v11 = vmax.f32 %v664_v9, 0.0  ;;  %v3097_v19 = vpack.c.bf16 %v706_v18, %v705_v16 }
 0x128   : > { %1046 = vmatprep.mubr.bf16.mxu1 %v2637_v54  ;;  %1239 = vmatprep.mubr.bf16.mxu0 %v2637_v54 }
 0x129   : > { %v3089_v14 = vpack.c.bf16 %v704_v11, %v703_v10 }
 0x12f   : > { %2398 = vmatmul.mubr.msk.bf16.gmra.mxu1 %vm915_vm3, %v2997_v7  ;;  %2414 = vmatmul.mubr.msk.bf16.gmra.mxu0 %vm915_vm3, %v2997_v7 }
 0x130   : > { %1056 = vmatprep.mubr.bf16.mxu1 %v2637_v54  ;;  %1249 = vmatprep.mubr.bf16.mxu0 %v2637_v54 }
 0x137   : > { %2399 = vmatmul.mubr.msk.bf16.gmra.mxu1 %vm915_vm3, %v3009_v17  ;;  %2415 = vmatmul.mubr.msk.bf16.gmra.mxu0 %vm915_vm3, %v3009_v17 }
 0x138   : > { %1066 = vmatprep.mubr.bf16.mxu1 %v2637_v54  ;;  %1259 = vmatprep.mubr.bf16.mxu0 %v2637_v54 }
 0x13f   : > { %2400 = vmatmul.mubr.msk.bf16.gmra.mxu1 %vm915_vm3, %v3017_v22  ;;  %2416 = vmatmul.mubr.msk.bf16.gmra.mxu0 %vm915_vm3, %v3017_v22 }
 0x140   : > { %1076 = vmatprep.mubr.bf16.mxu1 %v2637_v54  ;;  %1269 = vmatprep.mubr.bf16.mxu0 %v2637_v54 }
 0x147   : > { %2401 = vmatmul.mubr.msk.bf16.gmra.mxu1 %vm915_vm3, %v3029_v31  ;;  %2417 = vmatmul.mubr.msk.bf16.gmra.mxu0 %vm915_vm3, %v3029_v31 }
 0x148   : > { %1086 = vmatprep.mubr.bf16.mxu1 %v2637_v54  ;;  %1279 = vmatprep.mubr.bf16.mxu0 %v2637_v54 }
 0x14f   : > { %2402 = vmatmul.mubr.msk.bf16.gmra.mxu1 %vm915_vm3, %v3037_v36  ;;  %2418 = vmatmul.mubr.msk.bf16.gmra.mxu0 %vm915_vm3, %v3037_v36 }
 0x150   : > { %1096 = vmatprep.mubr.bf16.mxu1 %v2637_v54  ;;  %1289 = vmatprep.mubr.bf16.mxu0 %v2637_v54 }
 0x157   : > { %2403 = vmatmul.mubr.msk.bf16.gmra.mxu1 %vm915_vm3, %v3049_v46  ;;  %2419 = vmatmul.mubr.msk.bf16.gmra.mxu0 %vm915_vm3, %v3049_v46 }
 0x158   : > { %1106 = vmatprep.mubr.bf16.mxu1 %v2637_v54  ;;  %1299 = vmatprep.mubr.bf16.mxu0 %v2637_v54 }
 0x15f   : > { %2404 = vmatmul.mubr.msk.bf16.gmra.mxu1 %vm915_vm3, %v3057_v52  ;;  %2420 = vmatmul.mubr.msk.bf16.gmra.mxu0 %vm915_vm3, %v3057_v52 }
 0x160   : > { %1116 = vmatprep.mubr.bf16.mxu1 %v2637_v54  ;;  %1309 = vmatprep.mubr.bf16.mxu0 %v2637_v54 }
 0x167   : > { %2405 = vmatmul.mubr.msk.bf16.gmra.mxu1 %vm915_vm3, %v3069_v63  ;;  %2421 = vmatmul.mubr.msk.bf16.gmra.mxu0 %vm915_vm3, %v3069_v63 }
 0x168   : > { %1126 = vmatprep.mubr.bf16.mxu1 %v2637_v54  ;;  %1319 = vmatprep.mubr.bf16.mxu0 %v2637_v54 }
 0x16f   : > { %2406 = vmatmul.mubr.msk.bf16.gmra.mxu1 %vm915_vm3, %v3077_v6  ;;  %2422 = vmatmul.mubr.msk.bf16.gmra.mxu0 %vm915_vm3, %v3077_v6 }
 0x170   : > { %1136 = vmatprep.mubr.bf16.mxu1 %v2637_v54  ;;  %1329 = vmatprep.mubr.bf16.mxu0 %v2637_v54 }
 0x177   : > { %2407 = vmatmul.mubr.msk.bf16.gmra.mxu1 %vm915_vm3, %v3089_v14  ;;  %2423 = vmatmul.mubr.msk.bf16.gmra.mxu0 %vm915_vm3, %v3089_v14 }
 0x178   : > { %1146 = vmatprep.mubr.bf16.mxu1 %v2637_v54  ;;  %1339 = vmatprep.mubr.bf16.mxu0 %v2637_v54 }
 0x17f   : > { %2408 = vmatmul.mubr.msk.bf16.gmra.mxu1 %vm915_vm3, %v3097_v19  ;;  %2424 = vmatmul.mubr.msk.bf16.gmra.mxu0 %vm915_vm3, %v3097_v19 }
 0x180   : > { %1382 = vmatprep.mubr.bf16.mxu1 %v2637_v54  ;;  %1575 = vmatprep.mubr.bf16.mxu0 %v2637_v54 }
 0x187   : > { %2425 = vmatmul.mubr.msk.bf16.vlgmr.msra.gmra.mxu1 %vm915_vm3, %v2923_v15  ;;  %2441 = vmatmul.mubr.msk.bf16.vlgmr.msra.gmra.mxu0 %vm915_vm3, %v2923_v15 }
 0x188   : > { %1392 = vmatprep.mubr.bf16.mxu1 %v2637_v54  ;;  %1585 = vmatprep.mubr.bf16.mxu0 %v2637_v54 }
 0x18f   : > { %2426 = vmatmul.mubr.msk.bf16.gmra.mxu1 %vm915_vm3, %v2956_v37  ;;  %2442 = vmatmul.mubr.msk.bf16.gmra.mxu0 %vm915_vm3, %v2956_v37 }
 0x190   : > { %1402 = vmatprep.mubr.bf16.mxu1 %v2637_v54  ;;  %1595 = vmatprep.mubr.bf16.mxu0 %v2637_v54 }
 0x197   : > { %2427 = vmatmul.mubr.msk.bf16.gmra.mxu1 %vm915_vm3, %v2969_v50  ;;  %2443 = vmatmul.mubr.msk.bf16.gmra.mxu0 %vm915_vm3, %v2969_v50 }
 0x198   : > { %1412 = vmatprep.mubr.bf16.mxu1 %v2637_v54  ;;  %1605 = vmatprep.mubr.bf16.mxu0 %v2637_v54 }
 0x19f   : > { %2428 = vmatmul.mubr.msk.bf16.gmra.mxu1 %vm915_vm3, %v2977_v56  ;;  %2444 = vmatmul.mubr.msk.bf16.gmra.mxu0 %vm915_vm3, %v2977_v56 }
 0x1a0   : > { %1422 = vmatprep.mubr.bf16.mxu1 %v2637_v54  ;;  %1615 = vmatprep.mubr.bf16.mxu0 %v2637_v54 }
 0x1a7   : > { %2429 = vmatmul.mubr.msk.bf16.gmra.mxu1 %vm915_vm3, %v2989_v2  ;;  %2445 = vmatmul.mubr.msk.bf16.gmra.mxu0 %vm915_vm3, %v2989_v2 }
 0x1a8   : > { %1432 = vmatprep.mubr.bf16.mxu1 %v2637_v54  ;;  %1625 = vmatprep.mubr.bf16.mxu0 %v2637_v54 }
 0x1af   : > { %2430 = vmatmul.mubr.msk.bf16.gmra.mxu1 %vm915_vm3, %v2997_v7  ;;  %2446 = vmatmul.mubr.msk.bf16.gmra.mxu0 %vm915_vm3, %v2997_v7 }
 0x1b0   : > { %1442 = vmatprep.mubr.bf16.mxu1 %v2637_v54  ;;  %1635 = vmatprep.mubr.bf16.mxu0 %v2637_v54 }
 0x1b7   : > { %2431 = vmatmul.mubr.msk.bf16.gmra.mxu1 %vm915_vm3, %v3009_v17  ;;  %2447 = vmatmul.mubr.msk.bf16.gmra.mxu0 %vm915_vm3, %v3009_v17 }
 0x1b8   : > { %1452 = vmatprep.mubr.bf16.mxu1 %v2637_v54  ;;  %1645 = vmatprep.mubr.bf16.mxu0 %v2637_v54 }
 0x1bf   : > { %2432 = vmatmul.mubr.msk.bf16.gmra.mxu1 %vm915_vm3, %v3017_v22  ;;  %2448 = vmatmul.mubr.msk.bf16.gmra.mxu0 %vm915_vm3, %v3017_v22 }
 0x1c0   : > { %1462 = vmatprep.mubr.bf16.mxu1 %v2637_v54  ;;  %1655 = vmatprep.mubr.bf16.mxu0 %v2637_v54 }
 0x1c7   : > { %v998_v1 = vpop.f32.mrf.mxu1  ;;  %v1191_v15 = vpop.f32.mrf.mxu0  ;;  %2433 = vmatmul.mubr.msk.bf16.gmra.mxu1 %vm915_vm3, %v3029_v31  ;;  %2449 = vmatmul.mubr.msk.bf16.gmra.mxu0 %vm915_vm3, %v3029_v31 }
 0x1c8   : > { %1472 = vmatprep.mubr.bf16.mxu1 %v2637_v54  ;;  %1665 = vmatprep.mubr.bf16.mxu0 %v2637_v54 }
 0x1c9   : > { %v1000_v37 = vpop.f32.mrf.mxu1  ;;  %v1193_v50 = vpop.f32.mrf.mxu0 }
 0x1cb   : > { %v1002_v56 = vpop.f32.mrf.mxu1  ;;  %v1195_v2 = vpop.f32.mrf.mxu0 }
 0x1cc   : > { %v1736_v7 = vmax.f32 %v998_v1, %v1002_v56  ;;  %v1778_v17 = vmax.f32 %v1191_v15, %v1195_v2 }
 0x1cd   : > { %v1004_v20 = vpop.f32.mrf.mxu1  ;;  %v1197_v21 = vpop.f32.mrf.mxu0 }
 0x1ce   : > { %v1757_v22 = vmax.f32 %v1000_v37, %v1004_v20  ;;  %v1799_v23 = vmax.f32 %v1193_v50, %v1197_v21 }
 0x1cf   : > { %v1008_v24 = vpop.f32.mrf.mxu1  ;;  %v1201_v25 = vpop.f32.mrf.mxu0  ;;  %2434 = vmatmul.mubr.msk.bf16.gmra.mxu1 %vm915_vm3, %v3037_v36  ;;  %2450 = vmatmul.mubr.msk.bf16.gmra.mxu0 %vm915_vm3, %v3037_v36 }
 0x1d0   : > { %v1737_v26 = vmax.f32 %v1736_v7, %v1008_v24  ;;  %v1779_v27 = vmax.f32 %v1778_v17, %v1201_v25  ;;  %1482 = vmatprep.mubr.bf16.mxu1 %v2637_v54  ;;  %1675 = vmatprep.mubr.bf16.mxu0 %v2637_v54 }
 0x1d1   : > { %v1010_v28 = vpop.f32.mrf.mxu1  ;;  %v1203_v29 = vpop.f32.mrf.mxu0 }
 0x1d2   : > { %v1758_v30 = vmax.f32 %v1757_v22, %v1010_v28  ;;  %v1800_v31 = vmax.f32 %v1799_v23, %v1203_v29 }
 0x1d3   : > { %v1012_v32 = vpop.f32.mrf.mxu1  ;;  %v1205_v33 = vpop.f32.mrf.mxu0 }
 0x1d4   : > { %v1738_v34 = vmax.f32 %v1737_v26, %v1012_v32  ;;  %v1780_v35 = vmax.f32 %v1779_v27, %v1205_v33 }
 0x1d5   : > { %v1014_v38 = vpop.f32.mrf.mxu1  ;;  %v1207_v39 = vpop.f32.mrf.mxu0 }
 0x1d6   : > { %v1759_v40 = vmax.f32 %v1758_v30, %v1014_v38  ;;  %v1801_v41 = vmax.f32 %v1800_v31, %v1207_v39 }
 0x1d7   : > { %v1018_v42 = vpop.f32.mrf.mxu1  ;;  %v1211_v36 = vpop.f32.mrf.mxu0  ;;  %2435 = vmatmul.mubr.msk.bf16.gmra.mxu1 %vm915_vm3, %v3049_v46  ;;  %2451 = vmatmul.mubr.msk.bf16.gmra.mxu0 %vm915_vm3, %v3049_v46 }
 0x1d8   : > { %v1739_v43 = vmax.f32 %v1738_v34, %v1018_v42  ;;  %v1781_v44 = vmax.f32 %v1780_v35, %v1211_v36  ;;  %1492 = vmatprep.mubr.bf16.mxu1 %v2637_v54  ;;  %1685 = vmatprep.mubr.bf16.mxu0 %v2637_v54 }
 0x1d9   : > { %v1020_v45 = vpop.f32.mrf.mxu1  ;;  %v1213_v47 = vpop.f32.mrf.mxu0 }
 0x1da   : > { %v1760_v48 = vmax.f32 %v1759_v40, %v1020_v45  ;;  %v1802_v49 = vmax.f32 %v1801_v41, %v1213_v47 }
 0x1db   : > { %v1022_v51 = vpop.f32.mrf.mxu1  ;;  %v1215_v53 = vpop.f32.mrf.mxu0 }
 0x1dc   : > { %v1740_v55 = vmax.f32 %v1739_v43, %v1022_v51  ;;  %v1782_v57 = vmax.f32 %v1781_v44, %v1215_v53 }
 0x1dd   : > { %v1024_v58 = vpop.f32.mrf.mxu1  ;;  %v1217_v59 = vpop.f32.mrf.mxu0 }
 0x1de   : > { %v1761_v60 = vmax.f32 %v1760_v48, %v1024_v58  ;;  %v1803_v61 = vmax.f32 %v1802_v49, %v1217_v59 }
 0x1df   : > { %v1028_v62 = vpop.f32.mrf.mxu1  ;;  %v1221_v46 = vpop.f32.mrf.mxu0  ;;  %2436 = vmatmul.mubr.msk.bf16.gmra.mxu1 %vm915_vm3, %v3057_v52  ;;  %2452 = vmatmul.mubr.msk.bf16.gmra.mxu0 %vm915_vm3, %v3057_v52 }
 0x1e0   : > { %v1741_v0 = vmax.f32 %v1740_v55, %v1028_v62  ;;  %v1783_v3 = vmax.f32 %v1782_v57, %v1221_v46  ;;  %1502 = vmatprep.mubr.bf16.mxu1 %v2637_v54  ;;  %1695 = vmatprep.mubr.bf16.mxu0 %v2637_v54 }
 0x1e1   : > { %v1030_v4 = vpop.f32.mrf.mxu1  ;;  %v1223_v5 = vpop.f32.mrf.mxu0 }
 0x1e2   : > { %v1762_v8 = vmax.f32 %v1761_v60, %v1030_v4  ;;  %v1804_v9 = vmax.f32 %v1803_v61, %v1223_v5 }
 0x1e3   : > { %v1032_v10 = vpop.f32.mrf.mxu1  ;;  %v1225_v11 = vpop.f32.mrf.mxu0 }
 0x1e4   : > { %v1742_v12 = vmax.f32 %v1741_v0, %v1032_v10  ;;  %v1784_v13 = vmax.f32 %v1783_v3, %v1225_v11 }
 0x1e5   : > { %v1034_v16 = vpop.f32.mrf.mxu1  ;;  %v1227_v18 = vpop.f32.mrf.mxu0 }
 0x1e6   : > { %v1763_v1 = vmax.f32 %v1762_v8, %v1034_v16  ;;  %v1805_v15 = vmax.f32 %v1804_v9, %v1227_v18 }
 0x1e7   : > { %v1038_v37 = vpop.f32.mrf.mxu1  ;;  %v1231_v52 = vpop.f32.mrf.mxu0  ;;  %2437 = vmatmul.mubr.msk.bf16.gmra.mxu1 %vm915_vm3, %v3069_v63  ;;  %2453 = vmatmul.mubr.msk.bf16.gmra.mxu0 %vm915_vm3, %v3069_v63 }
 0x1e8   : > { %v1743_v50 = vmax.f32 %v1742_v12, %v1038_v37  ;;  %v1785_v56 = vmax.f32 %v1784_v13, %v1231_v52  ;;  %1512 = vmatprep.mubr.bf16.mxu1 %v2637_v54  ;;  %1705 = vmatprep.mubr.bf16.mxu0 %v2637_v54 }
 0x1e9   : > { %v1040_v2 = vpop.f32.mrf.mxu1  ;;  %v1233_v7 = vpop.f32.mrf.mxu0 }
 0x1ea   : > { %v1764_v17 = vmax.f32 %v1763_v1, %v1040_v2  ;;  %v1806_v20 = vmax.f32 %v1805_v15, %v1233_v7 }
 0x1eb   : > { %v1042_v21 = vpop.f32.mrf.mxu1  ;;  %v1235_v22 = vpop.f32.mrf.mxu0 }
 0x1ec   : > { %v1744_v23 = vmax.f32 %v1743_v50, %v1042_v21  ;;  %v1786_v24 = vmax.f32 %v1785_v56, %v1235_v22  ;;  %v2638_v21 = vmov 1983009808  }
 0x1ed   : > { %v1044_v25 = vpop.f32.mrf.mxu1  ;;  %v1237_v26 = vpop.f32.mrf.mxu0  ;;  %v2093_v22 = vunpack.c.l.s4 %v2638_v21 }
 0x1ee   : > { %v1765_v27 = vmax.f32 %v1764_v17, %v1044_v25  ;;  %v1807_v28 = vmax.f32 %v1806_v20, %v1237_v26 }
 0x1ef   : > { %v1048_v29 = vpop.f32.mrf.mxu1  ;;  %v1241_v63 = vpop.f32.mrf.mxu0  ;;  %2438 = vmatmul.mubr.msk.bf16.gmra.mxu1 %vm915_vm3, %v3077_v6  ;;  %2454 = vmatmul.mubr.msk.bf16.gmra.mxu0 %vm915_vm3, %v3077_v6 }
 0x1f0   : > { %v1745_v30 = vmax.f32 %v1744_v23, %v1048_v29  ;;  %v1787_v31 = vmax.f32 %v1786_v24, %v1241_v63  ;;  %1522 = vmatprep.mubr.bf16.mxu1 %v2637_v54  ;;  %1715 = vmatprep.mubr.bf16.mxu0 %v2637_v54  ;;  %v2095_v23 = vlaneseq }
 0x1f1   : > { %v1050_v32 = vpop.f32.mrf.mxu1  ;;  %v1243_v33 = vpop.f32.mrf.mxu0 }
 0x1f2   : > { %v1766_v34 = vmax.f32 %v1765_v27, %v1050_v32  ;;  %v1808_v35 = vmax.f32 %v1807_v28, %v1243_v33 }
 0x1f3   : > { %v1052_v38 = vpop.f32.mrf.mxu1  ;;  %v1245_v39 = vpop.f32.mrf.mxu0 }
 0x1f4   : > { %v1746_v40 = vmax.f32 %v1745_v30, %v1052_v38  ;;  %v1788_v41 = vmax.f32 %v1787_v31, %v1245_v39  ;;  %v3207_v38 = vshrl.u32 %v2095_v23, 7 }
 0x1f5   : > { %v1054_v42 = vpop.f32.mrf.mxu1  ;;  %v1247_v36 = vpop.f32.mrf.mxu0 }
 0x1f6   : > { %v1767_v43 = vmax.f32 %v1766_v34, %v1054_v42  ;;  %v1809_v44 = vmax.f32 %v1808_v35, %v1247_v36  ;;  %v2094_v35 = vunpack.c.0.s8 %v2093_v22 }
 0x1f7   : > { %v1058_v45 = vpop.f32.mrf.mxu1  ;;  %v1251_v6 = vpop.f32.mrf.mxu0  ;;  %2439 = vmatmul.mubr.msk.bf16.gmra.mxu1 %vm915_vm3, %v3089_v14  ;;  %2455 = vmatmul.mubr.msk.bf16.gmra.mxu0 %vm915_vm3, %v3089_v14 }
 0x1f8   : > { %v1747_v47 = vmax.f32 %v1746_v40, %v1058_v45  ;;  %v1789_v48 = vmax.f32 %v1788_v41, %v1251_v6  ;;  %1532 = vmatprep.mubr.bf16.mxu1 %v2637_v54  ;;  %1725 = vmatprep.mubr.bf16.mxu0 %v2637_v54 }
 0x1f9   : > { %v1060_v49 = vpop.f32.mrf.mxu1  ;;  %v1253_v51 = vpop.f32.mrf.mxu0 }
 0x1fa   : > { %v1768_v53 = vmax.f32 %v1767_v43, %v1060_v49  ;;  %v1810_v55 = vmax.f32 %v1809_v44, %v1253_v51 }
 0x1fb   : > { %v1062_v57 = vpop.f32.mrf.mxu1  ;;  %v1255_v58 = vpop.f32.mrf.mxu0 }
 0x1fc   : > { %v1748_v59 = vmax.f32 %v1747_v47, %v1062_v57  ;;  %v1790_v60 = vmax.f32 %v1789_v48, %v1255_v58  ;;  %v3210_v48 = vsub.s32 %v2094_v35, %v3207_v38 }
 0x1fd   : > { %v1064_v61 = vpop.f32.mrf.mxu1  ;;  %v1257_v62 = vpop.f32.mrf.mxu0 }
 0x1fe   : > { %v1769_v46 = vmax.f32 %v1768_v53, %v1064_v61  ;;  %v1811_v0 = vmax.f32 %v1810_v55, %v1257_v62 }
 0x1ff   : > { %v1068_v3 = vpop.f32.mrf.mxu1  ;;  %v1261_v14 = vpop.f32.mrf.mxu0  ;;  %2440 = vmatmul.mubr.msk.bf16.gmra.mxu1 %vm915_vm3, %v3097_v19  ;;  %2456 = vmatmul.mubr.msk.bf16.gmra.mxu0 %vm915_vm3, %v3097_v19 }
 0x200   : > { %v1749_v54 = vmax.f32 %v1748_v59, %v1068_v3  ;;  %v1791_v4 = vmax.f32 %v1790_v60, %v1261_v14 }
 0x201   : > { %v1070_v5 = vpop.f32.mrf.mxu1  ;;  %v1263_v8 = vpop.f32.mrf.mxu0 }
 0x202   : > { %v1770_v9 = vmax.f32 %v1769_v46, %v1070_v5  ;;  %v1812_v10 = vmax.f32 %v1811_v0, %v1263_v8 }
 0x203   : > { %v1072_v11 = vpop.f32.mrf.mxu1  ;;  %v1265_v12 = vpop.f32.mrf.mxu0 }
 0x204   : > { %v1750_v13 = vmax.f32 %v1749_v54, %v1072_v11  ;;  %v1792_v16 = vmax.f32 %v1791_v4, %v1265_v12 }
 0x205   : > { %v1074_v18 = vpop.f32.mrf.mxu1  ;;  %v1267_v1 = vpop.f32.mrf.mxu0 }
 0x206   : > { %v1751_v15 = vrot.slane %v1750_v13, 4  ;;  %v1793_v37 = vrot.slane %v1792_v16, 4  ;;  %v1771_v52 = vmax.f32 %v1770_v9, %v1074_v18  ;;  %v1813_v50 = vmax.f32 %v1812_v10, %v1267_v1 }
 0x207   : > { %v3199_v56 = vpop.f32.mrf.mxu1  ;;  %v3201_v2 = vpop.f32.mrf.mxu0 }
 0x208   : > { %v1752_v19 = vmax.f32 %v1750_v13, %v1751_v15  ;;  %v1794_v7 = vmax.f32 %v1792_v16, %v1793_v37  ;;  %v1772_v17 = vrot.slane %v1771_v52, 4  ;;  %v1814_v20 = vrot.slane %v1813_v50, 4 }
 0x209   : > { %v3203_v24 = vpop.f32.mrf.mxu1  ;;  %v3205_v25 = vpop.f32.mrf.mxu0 }
 0x20a   : > { %v1753_v26 = vrot.slane %v1752_v19, 2  ;;  %v1795_v27 = vrot.slane %v1794_v7, 2  ;;  %v1773_v28 = vmax.f32 %v1771_v52, %v1772_v17  ;;  %v1815_v29 = vmax.f32 %v1813_v50, %v1814_v20 }
 0x20b   : > { %v1082_v63 = vpop.f32.mrf.mxu1  ;;  %v1275_v30 = vpop.f32.mrf.mxu0 }
 0x20c   : > { %v1754_v31 = vmax.f32 %v1752_v19, %v1753_v26  ;;  %v1796_v32 = vmax.f32 %v1794_v7, %v1795_v27  ;;  %v1774_v33 = vrot.slane %v1773_v28, 2  ;;  %v1816_v34 = vrot.slane %v1815_v29, 2 }
 0x20d   : > { %v1084_v39 = vpop.f32.mrf.mxu1  ;;  %v1277_v40 = vpop.f32.mrf.mxu0  ;;  %v1904_v20 = vmax.f32 %v3199_v56, %v1082_v63  ;;  %v1946_v21 = vmax.f32 %v3201_v2, %v1275_v30 }
 0x20e   : > { %v1755_v41 = vrot.slane %v1754_v31, 1  ;;  %v1797_v42 = vrot.slane %v1796_v32, 1  ;;  %v1775_v36 = vmax.f32 %v1773_v28, %v1774_v33  ;;  %v1817_v43 = vmax.f32 %v1815_v29, %v1816_v34 }
 0x20f   : > { %v1088_v44 = vpop.f32.mrf.mxu1  ;;  %v1281_v45 = vpop.f32.mrf.mxu0  ;;  %v1925_v26 = vmax.f32 %v3203_v24, %v1084_v39  ;;  %v1967_v27 = vmax.f32 %v3205_v25, %v1277_v40 }
 0x210   : > { %v1776_v6 = vrot.slane %v1775_v36, 1  ;;  %v1818_v47 = vrot.slane %v1817_v43, 1  ;;  %v1756_v53 = vmax.f32 %v1754_v31, %v1755_v41  ;;  %v1798_v55 = vmax.f32 %v1796_v32, %v1797_v42 }
 0x211   : > { %v1090_v49 = vpop.f32.mrf.mxu1  ;;  %v1283_v51 = vpop.f32.mrf.mxu0  ;;  %v1905_v28 = vmax.f32 %v1904_v20, %v1088_v44  ;;  %v1947_v29 = vmax.f32 %v1946_v21, %v1281_v45 }
 0x212   : > { %v1777_v57 = vmax.f32 %v1775_v36, %v1776_v6  ;;  %v1819_v58 = vmax.f32 %v1817_v43, %v1818_v47  ;;  %v1926_v33 = vmax.f32 %v1925_v26, %v1090_v49  ;;  %v1968_v34 = vmax.f32 %v1967_v27, %v1283_v51 }
 0x213   : > { %v1092_v59 = vpop.f32.mrf.mxu1  ;;  %v1285_v60 = vpop.f32.mrf.mxu0 }
 0x214   : > { %v2090_v61 = vcombine.low %v1756_v53, %v1777_v57  ;;  %v2091_v62 = vcombine.low %v1798_v55, %v1819_v58  ;;  %v1906_v35 = vmax.f32 %v1905_v28, %v1092_v59  ;;  %v1948_v41 = vmax.f32 %v1947_v29, %v1285_v60 }
 0x215   : > { %v1094_v46 = vpop.f32.mrf.mxu1  ;;  %v1287_v0 = vpop.f32.mrf.mxu0 }
 0x216   : > { %v3213_v3 = vrot.slane %v2090_v61, %v3210_v48  ;;  %v3216_v14 = vrot.slane %v2091_v62, %v3210_v48  ;;  %v1927_v43 = vmax.f32 %v1926_v33, %v1094_v46  ;;  %v1969_v56 = vmax.f32 %v1968_v34, %v1287_v0 }
 0x217   : > { %v1098_v54 = vpop.f32.mrf.mxu1  ;;  %v1291_v4 = vpop.f32.mrf.mxu0 }
 0x218   : > { %v2106_v5 = vcombine.low %v3213_v3, %v3216_v14  ;;  %v1907_v63 = vmax.f32 %v1906_v35, %v1098_v54  ;;  %v1949_v2 = vmax.f32 %v1948_v41, %v1291_v4 }
 0x219   : > { %v1100_v8 = vpop.f32.mrf.mxu1  ;;  %v1293_v9 = vpop.f32.mrf.mxu0 }
 0x21a   : > { %v1928_v47 = vmax.f32 %v1927_v43, %v1100_v8  ;;  %v1970_v24 = vmax.f32 %v1969_v56, %v1293_v9 }
 0x21b   : > { %v1102_v10 = vpop.f32.mrf.mxu1  ;;  %v1295_v11 = vpop.f32.mrf.mxu0 }
 0x21c   : > { %v1908_v39 = vmax.f32 %v1907_v63, %v1102_v10  ;;  %v1950_v25 = vmax.f32 %v1949_v2, %v1295_v11 }
 0x21d   : > { %v1104_v12 = vpop.f32.mrf.mxu1  ;;  %v1297_v13 = vpop.f32.mrf.mxu0 }
 0x21e   : > { %v1929_v45 = vmax.f32 %v1928_v47, %v1104_v12  ;;  %v1971_v53 = vmax.f32 %v1970_v24, %v1297_v13 }
 0x21f   : > { %v1108_v16 = vpop.f32.mrf.mxu1  ;;  %v1301_v18 = vpop.f32.mrf.mxu0 }
 0x220   : > { %v1909_v49 = vmax.f32 %v1908_v39, %v1108_v16  ;;  %v1951_v51 = vmax.f32 %v1950_v25, %v1301_v18 }
 0x221   : > { %v1110_v1 = vpop.f32.mrf.mxu1  ;;  %v1303_v15 = vpop.f32.mrf.mxu0 }
 0x222   : > { %v1930_v58 = vmax.f32 %v1929_v45, %v1110_v1  ;;  %v1972_v59 = vmax.f32 %v1971_v53, %v1303_v15 }
 0x223   : > { %v1112_v37 = vpop.f32.mrf.mxu1  ;;  %v1305_v52 = vpop.f32.mrf.mxu0 }
 0x224   : > { %v1910_v60 = vmax.f32 %v1909_v49, %v1112_v37  ;;  %v1952_v61 = vmax.f32 %v1951_v51, %v1305_v52 }
 0x225   : > { %v1114_v50 = vpop.f32.mrf.mxu1  ;;  %v1307_v19 = vpop.f32.mrf.mxu0 }
 0x226   : > { %v1931_v0 = vmax.f32 %v1930_v58, %v1114_v50  ;;  %v1973_v54 = vmax.f32 %v1972_v59, %v1307_v19 }
 0x227   : > { %v1118_v7 = vpop.f32.mrf.mxu1  ;;  %v1311_v17 = vpop.f32.mrf.mxu0 }
 0x228   : > { %v1911_v4 = vmax.f32 %v1910_v60, %v1118_v7  ;;  %v1953_v8 = vmax.f32 %v1952_v61, %v1311_v17 }
 0x229   : > { %v1120_v22 = vpop.f32.mrf.mxu1  ;;  %v1313_v23 = vpop.f32.mrf.mxu0 }
 0x22a   : > { %v1932_v11 = vmax.f32 %v1931_v0, %v1120_v22  ;;  %v1974_v20 = vmax.f32 %v1973_v54, %v1313_v23 }
 0x22b   : > { %v1122_v31 = vpop.f32.mrf.mxu1  ;;  %v1315_v32 = vpop.f32.mrf.mxu0 }
 0x22c   : > { %v1912_v12 = vmax.f32 %v1911_v4, %v1122_v31  ;;  %v1954_v13 = vmax.f32 %v1953_v8, %v1315_v32 }
 0x22d   : > { %v1124_v42 = vpop.f32.mrf.mxu1  ;;  %v1317_v36 = vpop.f32.mrf.mxu0 }
 0x22e   : > { %v1933_v21 = vmax.f32 %v1932_v11, %v1124_v42  ;;  %v1975_v26 = vmax.f32 %v1974_v20, %v1317_v36 }
 0x22f   : > { %v1128_v30 = vpop.f32.mrf.mxu1  ;;  %v1321_v6 = vpop.f32.mrf.mxu0 }
 0x230   : > { %v1913_v1 = vmax.f32 %v1912_v12, %v1128_v30  ;;  %v1955_v15 = vmax.f32 %v1954_v13, %v1321_v6 }
 0x231   : > { %v1130_v40 = vpop.f32.mrf.mxu1  ;;  %v1323_v44 = vpop.f32.mrf.mxu0 }
 0x232   : > { %v1934_v27 = vmax.f32 %v1933_v21, %v1130_v40  ;;  %v1976_v28 = vmax.f32 %v1975_v26, %v1323_v44 }
 0x233   : > { %v1132_v55 = vpop.f32.mrf.mxu1  ;;  %v1325_v57 = vpop.f32.mrf.mxu0 }
 0x234   : > { %v1914_v50 = vmax.f32 %v1913_v1, %v1132_v55  ;;  %v1956_v19 = vmax.f32 %v1955_v15, %v1325_v57 }
 0x235   : > { %v1134_v62 = vpop.f32.mrf.mxu1  ;;  %v1327_v46 = vpop.f32.mrf.mxu0 }
 0x236   : > { %v1935_v29 = vmax.f32 %v1934_v27, %v1134_v62  ;;  %v1977_v33 = vmax.f32 %v1976_v28, %v1327_v46 }
 0x237   : > { %v1138_v9 = vpop.f32.mrf.mxu1  ;;  %v1331_v10 = vpop.f32.mrf.mxu0 }
 0x238   : > { %v1915_v22 = vmax.f32 %v1914_v50, %v1138_v9  ;;  %v1957_v23 = vmax.f32 %v1956_v19, %v1331_v10 }
 0x239   : > { %v1140_v16 = vpop.f32.mrf.mxu1  ;;  %v1333_v18 = vpop.f32.mrf.mxu0 }
 0x23a   : > { %v1936_v34 = vmax.f32 %v1935_v29, %v1140_v16  ;;  %v1978_v35 = vmax.f32 %v1977_v33, %v1333_v18 }
 0x23b   : > { %v1142_v37 = vpop.f32.mrf.mxu1  ;;  %v1335_v52 = vpop.f32.mrf.mxu0 }
 0x23c   : > { %v1916_v41 = vmax.f32 %v1915_v22, %v1142_v37  ;;  %v1958_v42 = vmax.f32 %v1957_v23, %v1335_v52 }
 0x23d   : > { %v1144_v7 = vpop.f32.mrf.mxu1  ;;  %v1337_v17 = vpop.f32.mrf.mxu0 }
 0x23e   : > { %v1937_v56 = vmax.f32 %v1936_v34, %v1144_v7  ;;  %v1979_v63 = vmax.f32 %v1978_v35, %v1337_v17 }
 0x23f   : > { %v1148_v31 = vpop.f32.mrf.mxu1  ;;  %v1341_v32 = vpop.f32.mrf.mxu0 }
 0x240   : > { %v1917_v2 = vmax.f32 %v1916_v41, %v1148_v31  ;;  %v1959_v30 = vmax.f32 %v1958_v42, %v1341_v32 }
 0x241   : > { %v1150_v36 = vpop.f32.mrf.mxu1  ;;  %v1343_v43 = vpop.f32.mrf.mxu0 }
 0x242   : > { %v1938_v24 = vmax.f32 %v1937_v56, %v1150_v36  ;;  %v1980_v39 = vmax.f32 %v1979_v63, %v1343_v43 }
 0x243   : > { %v1152_v6 = vpop.f32.mrf.mxu1  ;;  %v1345_v47 = vpop.f32.mrf.mxu0 }
 0x244   : > { %v1918_v25 = vmax.f32 %v1917_v2, %v1152_v6  ;;  %v1960_v40 = vmax.f32 %v1959_v30, %v1345_v47 }
 0x245   : > { %v1154_v44 = vpop.f32.mrf.mxu1  ;;  %v1347_v45 = vpop.f32.mrf.mxu0 }
 0x246   : > { %v1919_v53 = vrot.slane %v1918_v25, 4  ;;  %v1961_v49 = vrot.slane %v1960_v40, 4  ;;  %v1939_v51 = vmax.f32 %v1938_v24, %v1154_v44  ;;  %v1981_v55 = vmax.f32 %v1980_v39, %v1347_v45 }
 0x247   : > { %v1384_v57 = vpop.f32.mrf.mxu1  ;;  %v1577_v58 = vpop.f32.mrf.mxu0 }
 0x248   : > { %v1920_v59 = vmax.f32 %v1918_v25, %v1919_v53  ;;  %v1962_v60 = vmax.f32 %v1960_v40, %v1961_v49  ;;  %v1940_v61 = vrot.slane %v1939_v51, 4  ;;  %v1982_v62 = vrot.slane %v1981_v55, 4 }
 0x249   : > { %v1386_v46 = vpop.f32.mrf.mxu1  ;;  %v1579_v0 = vpop.f32.mrf.mxu0 }
 0x24a   : > { %v1921_v54 = vrot.slane %v1920_v59, 2  ;;  %v1963_v4 = vrot.slane %v1962_v60, 2  ;;  %v1941_v8 = vmax.f32 %v1939_v51, %v1940_v61  ;;  %v1983_v9 = vmax.f32 %v1981_v55, %v1982_v62 }
 0x24b   : > { %v1388_v10 = vpop.f32.mrf.mxu1  ;;  %v1581_v11 = vpop.f32.mrf.mxu0 }
 0x24c   : > { %v1922_v20 = vmax.f32 %v1920_v59, %v1921_v54  ;;  %v1964_v12 = vmax.f32 %v1962_v60, %v1963_v4  ;;  %v1942_v13 = vrot.slane %v1941_v8, 2  ;;  %v1984_v16 = vrot.slane %v1983_v9, 2 }
 0x24d   : > { %v1820_v18 = vmax.f32 %v1384_v57, %v1388_v10  ;;  %v1862_v21 = vmax.f32 %v1577_v58, %v1581_v11  ;;  %v1390_v26 = vpop.f32.mrf.mxu1  ;;  %v1583_v1 = vpop.f32.mrf.mxu0 }
 0x24e   : > { %v1923_v15 = vrot.slane %v1922_v20, 1  ;;  %v1965_v37 = vrot.slane %v1964_v12, 1  ;;  %v1943_v52 = vmax.f32 %v1941_v8, %v1942_v13  ;;  %v1985_v27 = vmax.f32 %v1983_v9, %v1984_v16  ;;  %v2072_v8 = vld [vmem:[#allocation3] sm:$0xff] }
 0x24f   : > { %v1841_v28 = vmax.f32 %v1386_v46, %v1390_v26  ;;  %v1883_v50 = vmax.f32 %v1579_v0, %v1583_v1  ;;  %v1394_v19 = vpop.f32.mrf.mxu1  ;;  %v1587_v7 = vpop.f32.mrf.mxu0 }
 0x250   : > { %v1944_v17 = vrot.slane %v1943_v52, 1  ;;  %v1986_v29 = vrot.slane %v1985_v27, 1  ;;  %v1924_v33 = vmax.f32 %v1922_v20, %v1923_v15  ;;  %v1966_v22 = vmax.f32 %v1964_v12, %v1965_v37 }
 0x251   : > { %v1821_v23 = vmax.f32 %v1820_v18, %v1394_v19  ;;  %v1863_v31 = vmax.f32 %v1862_v21, %v1587_v7  ;;  %v1396_v32 = vpop.f32.mrf.mxu1  ;;  %v1589_v34 = vpop.f32.mrf.mxu0 }
 0x252   : > { %v1945_v35 = vmax.f32 %v1943_v52, %v1944_v17  ;;  %v1987_v41 = vmax.f32 %v1985_v27, %v1986_v29  ;;  %v1842_v42 = vmax.f32 %v1841_v28, %v1396_v32  ;;  %v1884_v36 = vmax.f32 %v1883_v50, %v1589_v34 }
 0x253   : > { %v1398_v43 = vpop.f32.mrf.mxu1  ;;  %v1591_v56 = vpop.f32.mrf.mxu0 }
 0x254   : > { %v2124_v63 = vcombine.low %v1924_v33, %v1945_v35  ;;  %v2125_v2 = vcombine.low %v1966_v22, %v1987_v41  ;;  %v1822_v30 = vmax.f32 %v1821_v23, %v1398_v43  ;;  %v1864_v6 = vmax.f32 %v1863_v31, %v1591_v56 }
 0x255   : > { %v1400_v47 = vpop.f32.mrf.mxu1  ;;  %v1593_v24 = vpop.f32.mrf.mxu0 }
 0x256   : > { %v2132_v39 = vrot.slane %v2124_v63, %v3210_v48  ;;  %v2139_v25 = vrot.slane %v2125_v2, %v3210_v48  ;;  %v1843_v40 = vmax.f32 %v1842_v42, %v1400_v47  ;;  %v1885_v44 = vmax.f32 %v1884_v36, %v1593_v24 }
 0x257   : > { %v1404_v45 = vpop.f32.mrf.mxu1  ;;  %v1597_v53 = vpop.f32.mrf.mxu0 }
 0x258   : > { %v2140_v49 = vcombine.low %v2132_v39, %v2139_v25  ;;  %v1823_v51 = vmax.f32 %v1822_v30, %v1404_v45  ;;  %v1865_v55 = vmax.f32 %v1864_v6, %v1597_v53 }
 0x259   : > { %v1406_v57 = vpop.f32.mrf.mxu1  ;;  %v1599_v58 = vpop.f32.mrf.mxu0 }
 0x25a   : > { %v2162_v59 = vrot.slane %v2140_v49, 7  ;;  %v1844_v60 = vmax.f32 %v1843_v40, %v1406_v57  ;;  %v1886_v61 = vmax.f32 %v1885_v44, %v1599_v58 }
 0x25b   : > { %v1408_v62 = vpop.f32.mrf.mxu1  ;;  %v1601_v46 = vpop.f32.mrf.mxu0 }
 0x25c   : > { %v2164_v0 = vsel %vm2163_vm4, %v2162_v59, %v2106_v5  ;;  %v1824_v54 = vmax.f32 %v1823_v51, %v1408_v62  ;;  %v1866_v4 = vmax.f32 %v1865_v55, %v1601_v46 }
 0x25d   : > { %v2166_v9 = vsel %vm2165_vm5, %v2162_v59, %v2164_v0  ;;  %v1410_v10 = vpop.f32.mrf.mxu1  ;;  %v1603_v11 = vpop.f32.mrf.mxu0 }
 0x25e   : > { %v2168_v20 = vsel %vm2167_vm6, %v2162_v59, %v2166_v9  ;;  %v1845_v12 = vmax.f32 %v1844_v60, %v1410_v10  ;;  %v1887_v13 = vmax.f32 %v1886_v61, %v1603_v11 }
 0x25f   : > { %v2170_v16 = vsel %vm2169_vm7, %v2162_v59, %v2168_v20  ;;  %v1414_v18 = vpop.f32.mrf.mxu1  ;;  %v1607_v21 = vpop.f32.mrf.mxu0 }
 0x260   : > { %v2180_v26 = vmax.f32 %v2072_v8, %v2170_v16  ;;  %v1825_v3 = vmax.f32 %v1824_v54, %v1414_v18  ;;  %v1867_v14 = vmax.f32 %v1866_v4, %v1607_v21 }
 0x261   : > { %v1416_v5 = vpop.f32.mrf.mxu1  ;;  %v1609_v1 = vpop.f32.mrf.mxu0 }
 0x262   : > { %2182 = vst [vmem:[#allocation3] sm:$0xff] %v2180_v26  ;;  %v1846_v15 = vmax.f32 %v1845_v12, %v1416_v5  ;;  %v1888_v37 = vmax.f32 %v1887_v13, %v1609_v1 }
 0x263   : > { %v1418_v52 = vpop.f32.mrf.mxu1  ;;  %v1611_v27 = vpop.f32.mrf.mxu0 }
 0x264   : > { %v1826_v28 = vmax.f32 %v1825_v3, %v1418_v52  ;;  %v1868_v50 = vmax.f32 %v1867_v14, %v1611_v27 }
 0x265   : > { %v1420_v19 = vpop.f32.mrf.mxu1  ;;  %v1613_v7 = vpop.f32.mrf.mxu0 }
 0x266   : > { %v1847_v17 = vmax.f32 %v1846_v15, %v1420_v19  ;;  %v1889_v29 = vmax.f32 %v1888_v37, %v1613_v7 }
 0x267   : > { %v1424_v33 = vpop.f32.mrf.mxu1  ;;  %v1617_v22 = vpop.f32.mrf.mxu0 }
 0x268   : > { %v1827_v23 = vmax.f32 %v1826_v28, %v1424_v33  ;;  %v1869_v31 = vmax.f32 %v1868_v50, %v1617_v22 }
 0x269   : > { %v1426_v32 = vpop.f32.mrf.mxu1  ;;  %v1619_v34 = vpop.f32.mrf.mxu0 }
 0x26a   : > { %v1848_v35 = vmax.f32 %v1847_v17, %v1426_v32  ;;  %v1890_v41 = vmax.f32 %v1889_v29, %v1619_v34 }
 0x26b   : > { %v1428_v42 = vpop.f32.mrf.mxu1  ;;  %v1621_v36 = vpop.f32.mrf.mxu0 }
 0x26c   : > { %v1828_v43 = vmax.f32 %v1827_v23, %v1428_v42  ;;  %v1870_v56 = vmax.f32 %v1869_v31, %v1621_v36 }
 0x26d   : > { %v1430_v63 = vpop.f32.mrf.mxu1  ;;  %v1623_v2 = vpop.f32.mrf.mxu0 }
 0x26e   : > { %v1849_v30 = vmax.f32 %v1848_v35, %v1430_v63  ;;  %v1891_v6 = vmax.f32 %v1890_v41, %v1623_v2 }
 0x26f   : > { %v1434_v47 = vpop.f32.mrf.mxu1  ;;  %v1627_v24 = vpop.f32.mrf.mxu0 }
 0x270   : > { %v1829_v39 = vmax.f32 %v1828_v43, %v1434_v47  ;;  %v1871_v25 = vmax.f32 %v1870_v56, %v1627_v24 }
 0x271   : > { %v1436_v40 = vpop.f32.mrf.mxu1  ;;  %v1629_v44 = vpop.f32.mrf.mxu0 }
 0x272   : > { %v1850_v45 = vmax.f32 %v1849_v30, %v1436_v40  ;;  %v1892_v53 = vmax.f32 %v1891_v6, %v1629_v44 }
 0x273   : > { %v1438_v49 = vpop.f32.mrf.mxu1  ;;  %v1631_v51 = vpop.f32.mrf.mxu0 }
 0x274   : > { %v1830_v55 = vmax.f32 %v1829_v39, %v1438_v49  ;;  %v1872_v57 = vmax.f32 %v1871_v25, %v1631_v51 }
 0x275   : > { %v1440_v58 = vpop.f32.mrf.mxu1  ;;  %v1633_v59 = vpop.f32.mrf.mxu0 }
 0x276   : > { %v1851_v60 = vmax.f32 %v1850_v45, %v1440_v58  ;;  %v1893_v61 = vmax.f32 %v1892_v53, %v1633_v59 }
 0x277   : > { %v1444_v62 = vpop.f32.mrf.mxu1  ;;  %v1637_v46 = vpop.f32.mrf.mxu0 }
 0x278   : > { %v1831_v0 = vmax.f32 %v1830_v55, %v1444_v62  ;;  %v1873_v54 = vmax.f32 %v1872_v57, %v1637_v46 }
 0x279   : > { %v1446_v4 = vpop.f32.mrf.mxu1  ;;  %v1639_v8 = vpop.f32.mrf.mxu0 }
 0x27a   : > { %v1852_v9 = vmax.f32 %v1851_v60, %v1446_v4  ;;  %v1894_v10 = vmax.f32 %v1893_v61, %v1639_v8 }
 0x27b   : > { %v1448_v11 = vpop.f32.mrf.mxu1  ;;  %v1641_v20 = vpop.f32.mrf.mxu0 }
 0x27c   : > { %v1832_v12 = vmax.f32 %v1831_v0, %v1448_v11  ;;  %v1874_v13 = vmax.f32 %v1873_v54, %v1641_v20 }
 0x27d   : > { %v1450_v16 = vpop.f32.mrf.mxu1  ;;  %v1643_v18 = vpop.f32.mrf.mxu0 }
 0x27e   : > { %v1853_v21 = vmax.f32 %v1852_v9, %v1450_v16  ;;  %v1895_v26 = vmax.f32 %v1894_v10, %v1643_v18 }
 0x27f   : > { %v1454_v3 = vpop.f32.mrf.mxu1  ;;  %v1647_v14 = vpop.f32.mrf.mxu0 }
 0x280   : > { %v1833_v5 = vmax.f32 %v1832_v12, %v1454_v3  ;;  %v1875_v1 = vmax.f32 %v1874_v13, %v1647_v14 }
 0x281   : > { %v1456_v15 = vpop.f32.mrf.mxu1  ;;  %v1649_v37 = vpop.f32.mrf.mxu0 }
 0x282   : > { %v1854_v52 = vmax.f32 %v1853_v21, %v1456_v15  ;;  %v1896_v27 = vmax.f32 %v1895_v26, %v1649_v37 }
 0x283   : > { %v1458_v28 = vpop.f32.mrf.mxu1  ;;  %v1651_v50 = vpop.f32.mrf.mxu0 }
 0x284   : > { %v1834_v19 = vmax.f32 %v1833_v5, %v1458_v28  ;;  %v1876_v7 = vmax.f32 %v1875_v1, %v1651_v50 }
 0x285   : > { %v1460_v17 = vpop.f32.mrf.mxu1  ;;  %v1653_v29 = vpop.f32.mrf.mxu0 }
 0x286   : > { %v1835_v33 = vrot.slane %v1834_v19, 4  ;;  %v1877_v22 = vrot.slane %v1876_v7, 4  ;;  %v1855_v23 = vmax.f32 %v1854_v52, %v1460_v17  ;;  %v1897_v31 = vmax.f32 %v1896_v27, %v1653_v29 }
 0x287   : > { %v3233_v32 = vpop.f32.mrf.mxu1  ;;  %v3235_v34 = vpop.f32.mrf.mxu0 }
 0x288   : > { %v1836_v35 = vmax.f32 %v1834_v19, %v1835_v33  ;;  %v1878_v41 = vmax.f32 %v1876_v7, %v1877_v22  ;;  %v1856_v42 = vrot.slane %v1855_v23, 4  ;;  %v1898_v36 = vrot.slane %v1897_v31, 4 }
 0x289   : > { %v3237_v43 = vpop.f32.mrf.mxu1  ;;  %v3239_v56 = vpop.f32.mrf.mxu0 }
 0x28a   : > { %v1837_v63 = vrot.slane %v1836_v35, 2  ;;  %v1879_v2 = vrot.slane %v1878_v41, 2  ;;  %v1857_v30 = vmax.f32 %v1855_v23, %v1856_v42  ;;  %v1899_v6 = vmax.f32 %v1897_v31, %v1898_v36 }
 0x28b   : > { %v1468_v47 = vpop.f32.mrf.mxu1  ;;  %v1661_v24 = vpop.f32.mrf.mxu0 }
 0x28c   : > { %v1838_v39 = vmax.f32 %v1836_v35, %v1837_v63  ;;  %v1880_v25 = vmax.f32 %v1878_v41, %v1879_v2  ;;  %v1858_v40 = vrot.slane %v1857_v30, 2  ;;  %v1900_v44 = vrot.slane %v1899_v6, 2 }
 0x28d   : > { %v1470_v45 = vpop.f32.mrf.mxu1  ;;  %v1663_v53 = vpop.f32.mrf.mxu0  ;;  %v1988_v31 = vmax.f32 %v3233_v32, %v1468_v47  ;;  %v2030_v35 = vmax.f32 %v3235_v34, %v1661_v24 }
 0x28e   : > { %v1839_v49 = vrot.slane %v1838_v39, 1  ;;  %v1881_v51 = vrot.slane %v1880_v25, 1  ;;  %v1859_v55 = vmax.f32 %v1857_v30, %v1858_v40  ;;  %v1901_v57 = vmax.f32 %v1899_v6, %v1900_v44 }
 0x28f   : > { %v1474_v58 = vpop.f32.mrf.mxu1  ;;  %v1667_v59 = vpop.f32.mrf.mxu0  ;;  %v2009_v36 = vmax.f32 %v3237_v43, %v1470_v45  ;;  %v2051_v63 = vmax.f32 %v3239_v56, %v1663_v53 }
 0x290   : > { %v1860_v60 = vrot.slane %v1859_v55, 1  ;;  %v1902_v61 = vrot.slane %v1901_v57, 1  ;;  %v1840_v0 = vmax.f32 %v1838_v39, %v1839_v49  ;;  %v1882_v54 = vmax.f32 %v1880_v25, %v1881_v51 }
 0x291   : > { %v1476_v62 = vpop.f32.mrf.mxu1  ;;  %v1669_v46 = vpop.f32.mrf.mxu0  ;;  %v1989_v2 = vmax.f32 %v1988_v31, %v1474_v58  ;;  %v2031_v30 = vmax.f32 %v2030_v35, %v1667_v59 }
 0x292   : > { %v1861_v4 = vmax.f32 %v1859_v55, %v1860_v60  ;;  %v1903_v8 = vmax.f32 %v1901_v57, %v1902_v61  ;;  %v2010_v25 = vmax.f32 %v2009_v36, %v1476_v62  ;;  %v2052_v40 = vmax.f32 %v2051_v63, %v1669_v46 }
 0x293   : > { %v1478_v9 = vpop.f32.mrf.mxu1  ;;  %v1671_v10 = vpop.f32.mrf.mxu0 }
 0x294   : > { %v2107_v11 = vcombine.low %v1840_v0, %v1861_v4  ;;  %v2108_v20 = vcombine.low %v1882_v54, %v1903_v8  ;;  %v1990_v44 = vmax.f32 %v1989_v2, %v1478_v9  ;;  %v2032_v49 = vmax.f32 %v2031_v30, %v1671_v10 }
 0x295   : > { %v1480_v12 = vpop.f32.mrf.mxu1  ;;  %v1673_v13 = vpop.f32.mrf.mxu0 }
 0x296   : > { %v3242_v16 = vrot.slane %v2107_v11, %v3210_v48  ;;  %v3245_v18 = vrot.slane %v2108_v20, %v3210_v48  ;;  %v2011_v57 = vmax.f32 %v2010_v25, %v1480_v12  ;;  %v2053_v32 = vmax.f32 %v2052_v40, %v1673_v13 }
 0x297   : > { %v1484_v21 = vpop.f32.mrf.mxu1  ;;  %v1677_v26 = vpop.f32.mrf.mxu0 }
 0x298   : > { %v2123_v3 = vcombine.low %v3242_v16, %v3245_v18  ;;  %v1991_v47 = vmax.f32 %v1990_v44, %v1484_v21  ;;  %v2033_v34 = vmax.f32 %v2032_v49, %v1677_v26 }
 0x299   : > { %v1486_v14 = vpop.f32.mrf.mxu1  ;;  %v1679_v5 = vpop.f32.mrf.mxu0 }
 0x29a   : > { %v2012_v61 = vmax.f32 %v2011_v57, %v1486_v14  ;;  %v2054_v43 = vmax.f32 %v2053_v32, %v1679_v5 }
 0x29b   : > { %v1488_v1 = vpop.f32.mrf.mxu1  ;;  %v1681_v15 = vpop.f32.mrf.mxu0 }
 0x29c   : > { %v1992_v45 = vmax.f32 %v1991_v47, %v1488_v1  ;;  %v2034_v56 = vmax.f32 %v2033_v34, %v1681_v15 }
 0x29d   : > { %v1490_v37 = vpop.f32.mrf.mxu1  ;;  %v1683_v52 = vpop.f32.mrf.mxu0 }
 0x29e   : > { %v2013_v59 = vmax.f32 %v2012_v61, %v1490_v37  ;;  %v2055_v0 = vmax.f32 %v2054_v43, %v1683_v52 }
 0x29f   : > { %v1494_v27 = vpop.f32.mrf.mxu1  ;;  %v1687_v28 = vpop.f32.mrf.mxu0 }
 0x2a0   : > { %v1993_v62 = vmax.f32 %v1992_v45, %v1494_v27  ;;  %v2035_v46 = vmax.f32 %v2034_v56, %v1687_v28 }
 0x2a1   : > { %v1496_v50 = vpop.f32.mrf.mxu1  ;;  %v1689_v19 = vpop.f32.mrf.mxu0 }
 0x2a2   : > { %v2014_v8 = vmax.f32 %v2013_v59, %v1496_v50  ;;  %v2056_v9 = vmax.f32 %v2055_v0, %v1689_v19 }
 0x2a3   : > { %v1498_v7 = vpop.f32.mrf.mxu1  ;;  %v1691_v17 = vpop.f32.mrf.mxu0 }
 0x2a4   : > { %v1994_v10 = vmax.f32 %v1993_v62, %v1498_v7  ;;  %v2036_v11 = vmax.f32 %v2035_v46, %v1691_v17 }
 0x2a5   : > { %v1500_v29 = vpop.f32.mrf.mxu1  ;;  %v1693_v33 = vpop.f32.mrf.mxu0 }
 0x2a6   : > { %v2015_v13 = vmax.f32 %v2014_v8, %v1500_v29  ;;  %v2057_v21 = vmax.f32 %v2056_v9, %v1693_v33 }
 0x2a7   : > { %v1504_v22 = vpop.f32.mrf.mxu1  ;;  %v1697_v23 = vpop.f32.mrf.mxu0 }
 0x2a8   : > { %v1995_v26 = vmax.f32 %v1994_v10, %v1504_v22  ;;  %v2037_v14 = vmax.f32 %v2036_v11, %v1697_v23 }
 0x2a9   : > { %v1506_v41 = vpop.f32.mrf.mxu1  ;;  %v1699_v42 = vpop.f32.mrf.mxu0 }
 0x2aa   : > { %v2016_v15 = vmax.f32 %v2015_v13, %v1506_v41  ;;  %v2058_v31 = vmax.f32 %v2057_v21, %v1699_v42 }
 0x2ab   : > { %v1508_v6 = vpop.f32.mrf.mxu1  ;;  %v1701_v39 = vpop.f32.mrf.mxu0 }
 0x2ac   : > { %v1996_v37 = vmax.f32 %v1995_v26, %v1508_v6  ;;  %v2038_v52 = vmax.f32 %v2037_v14, %v1701_v39 }
 0x2ad   : > { %v1510_v51 = vpop.f32.mrf.mxu1  ;;  %v1703_v55 = vpop.f32.mrf.mxu0 }
 0x2ae   : > { %v2017_v35 = vmax.f32 %v2016_v15, %v1510_v51  ;;  %v2059_v36 = vmax.f32 %v2058_v31, %v1703_v55 }
 0x2af   : > { %v1514_v24 = vpop.f32.mrf.mxu1  ;;  %v1707_v60 = vpop.f32.mrf.mxu0 }
 0x2b0   : > { %v1997_v50 = vmax.f32 %v1996_v37, %v1514_v24  ;;  %v2039_v19 = vmax.f32 %v2038_v52, %v1707_v60 }
 0x2b1   : > { %v1516_v53 = vpop.f32.mrf.mxu1  ;;  %v1709_v58 = vpop.f32.mrf.mxu0 }
 0x2b2   : > { %v2018_v63 = vmax.f32 %v2017_v35, %v1516_v53  ;;  %v2060_v2 = vmax.f32 %v2059_v36, %v1709_v58 }
 0x2b3   : > { %v1518_v54 = vpop.f32.mrf.mxu1  ;;  %v1711_v4 = vpop.f32.mrf.mxu0 }
 0x2b4   : > { %v1998_v29 = vmax.f32 %v1997_v50, %v1518_v54  ;;  %v2040_v33 = vmax.f32 %v2039_v19, %v1711_v4 }
 0x2b5   : > { %v1520_v20 = vpop.f32.mrf.mxu1  ;;  %v1713_v12 = vpop.f32.mrf.mxu0 }
 0x2b6   : > { %v2019_v30 = vmax.f32 %v2018_v63, %v1520_v20  ;;  %v2061_v25 = vmax.f32 %v2060_v2, %v1713_v12 }
 0x2b7   : > { %v1524_v5 = vpop.f32.mrf.mxu1  ;;  %v1717_v1 = vpop.f32.mrf.mxu0 }
 0x2b8   : > { %v1999_v41 = vmax.f32 %v1998_v29, %v1524_v5  ;;  %v2041_v42 = vmax.f32 %v2040_v33, %v1717_v1 }
 0x2b9   : > { %v1526_v27 = vpop.f32.mrf.mxu1  ;;  %v1719_v28 = vpop.f32.mrf.mxu0 }
 0x2ba   : > { %v2020_v40 = vmax.f32 %v2019_v30, %v1526_v27  ;;  %v2062_v44 = vmax.f32 %v2061_v25, %v1719_v28 }
 0x2bb   : > { %v1528_v7 = vpop.f32.mrf.mxu1  ;;  %v1721_v17 = vpop.f32.mrf.mxu0 }
 0x2bc   : > { %v2000_v49 = vmax.f32 %v1999_v41, %v1528_v7  ;;  %v2042_v51 = vmax.f32 %v2041_v42, %v1721_v17 }
 0x2bd   : > { %v1530_v22 = vpop.f32.mrf.mxu1  ;;  %v1723_v23 = vpop.f32.mrf.mxu0 }
 0x2be   : > { %v2021_v32 = vmax.f32 %v2020_v40, %v1530_v22  ;;  %v2063_v47 = vmax.f32 %v2062_v44, %v1723_v23  ;;  %v2073_v22 = vld [vmem:[#allocation3 + $0x8] sm:$0xff] }
 0x2bf   : > { %v1534_v6 = vpop.f32.mrf.mxu1  ;;  %v1727_v39 = vpop.f32.mrf.mxu0 }
 0x2c0   : > { %v2001_v34 = vmax.f32 %v2000_v49, %v1534_v6  ;;  %v2043_v24 = vmax.f32 %v2042_v51, %v1727_v39 }
 0x2c1   : > { %v1536_v55 = vpop.f32.mrf.mxu1  ;;  %v1729_v57 = vpop.f32.mrf.mxu0 }
 0x2c2   : > { %v2022_v43 = vmax.f32 %v2021_v32, %v1536_v55  ;;  %v2064_v45 = vmax.f32 %v2063_v47, %v1729_v57 }
 0x2c3   : > { %v1538_v60 = vpop.f32.mrf.mxu1  ;;  %v1731_v61 = vpop.f32.mrf.mxu0 }
 0x2c4   : > { %v2002_v56 = vmax.f32 %v2001_v34, %v1538_v60  ;;  %v2044_v53 = vmax.f32 %v2043_v24, %v1731_v61 }
 0x2c5   : > { %v1540_v58 = vpop.f32.mrf.mxu1  ;;  %v1733_v59 = vpop.f32.mrf.mxu0 }
 0x2c6   : > { %v2003_v0 = vrot.slane %v2002_v56, 4  ;;  %v2045_v62 = vrot.slane %v2044_v53, 4  ;;  %v2023_v46 = vmax.f32 %v2022_v43, %v1540_v58  ;;  %v2065_v54 = vmax.f32 %v2064_v45, %v1733_v59 }
 0x2c8   : > { %v2004_v4 = vmax.f32 %v2002_v56, %v2003_v0  ;;  %v2046_v8 = vmax.f32 %v2044_v53, %v2045_v62  ;;  %v2024_v9 = vrot.slane %v2023_v46, 4  ;;  %v2066_v10 = vrot.slane %v2065_v54, 4 }
 0x2ca   : > { %v2005_v11 = vrot.slane %v2004_v4, 2  ;;  %v2047_v20 = vrot.slane %v2046_v8, 2  ;;  %v2025_v12 = vmax.f32 %v2023_v46, %v2024_v9  ;;  %v2067_v13 = vmax.f32 %v2065_v54, %v2066_v10 }
 0x2cc   : > { %v2006_v21 = vmax.f32 %v2004_v4, %v2005_v11  ;;  %v2048_v26 = vmax.f32 %v2046_v8, %v2047_v20  ;;  %v2026_v14 = vrot.slane %v2025_v12, 2  ;;  %v2068_v5 = vrot.slane %v2067_v13, 2 }
 0x2ce   : > { %v2007_v1 = vrot.slane %v2006_v21, 1  ;;  %v2049_v15 = vrot.slane %v2048_v26, 1  ;;  %v2027_v31 = vmax.f32 %v2025_v12, %v2026_v14  ;;  %v2069_v37 = vmax.f32 %v2067_v13, %v2068_v5 }
 0x2d0   : > { %v2028_v52 = vrot.slane %v2027_v31, 1  ;;  %v2070_v27 = vrot.slane %v2069_v37, 1  ;;  %v2008_v28 = vmax.f32 %v2006_v21, %v2007_v1  ;;  %v2050_v35 = vmax.f32 %v2048_v26, %v2049_v15 }
 0x2d2   : > { %v2029_v36 = vmax.f32 %v2027_v31, %v2028_v52  ;;  %v2071_v50 = vmax.f32 %v2069_v37, %v2070_v27 }
 0x2d4   : > { %v2141_v19 = vcombine.low %v2008_v28, %v2029_v36  ;;  %v2142_v7 = vcombine.low %v2050_v35, %v2071_v50 }
 0x2d6   : > { %v2149_v17 = vrot.slane %v2141_v19, %v3210_v48  ;;  %v2156_v63 = vrot.slane %v2142_v7, %v3210_v48 }
 0x2d8   : > { %v2157_v2 = vcombine.low %v2149_v17, %v2156_v63 }
 0x2da   : > { %v2173_v29 = vrot.slane %v2157_v2, 7 }
 0x2dc   : > { %v2174_v33 = vsel %vm2163_vm4, %v2173_v29, %v2123_v3 }
 0x2dd   : > { %v2175_v23 = vsel %vm2165_vm5, %v2173_v29, %v2174_v33 }
 0x2de   : > { %v2176_v30 = vsel %vm2167_vm6, %v2173_v29, %v2175_v23  ;;  %2187 = sbr.rel (%p2457_p10) target bundleno = 755 (0x2f3), region = 86 }
 0x2df   : > { %v2177_v25 = vsel %vm2169_vm7, %v2173_v29, %v2176_v30 }
 0x2e0   : > { %v2181_v41 = vmax.f32 %v2073_v22, %v2177_v25 }
 0x2e2   : > { %2183 = vst [vmem:[#allocation3 + $0x8] sm:$0xff] %v2181_v41 }
 0x2e3   : > { %v2190_v42 = vld [vmem:[%s3314_s4] sm:$0xff]  ;;  %v2194_v16 = vsub.s32 0, %v3207_v38  ;;  %v2198_v18 = vsub.s32 1, %v3207_v38  ;;  %v2202_v3 = vsub.s32 2, %v3207_v38  ;;  %v2206_v6 = vsub.s32 3, %v3207_v38 }
 0x2e4   : > { %v2210_v39 = vsub.s32 4, %v3207_v38  ;;  %v2214_v40 = vsub.s32 5, %v3207_v38  ;;  %v2218_v44 = vsub.s32 6, %v3207_v38  ;;  %v2222_v49 = vsub.s32 7, %v3207_v38  ;;  %v2188_v59 = vld [vmem:[#allocation3] sm:$0xff] }
 0x2e5   : > { %v2195_v51 = vrot.slane %v2190_v42, %v2194_v16  ;;  %v2199_v55 = vrot.slane %v2190_v42, %v2198_v18  ;;  %v2203_v57 = vrot.slane %v2190_v42, %v2202_v3  ;;  %v2207_v32 = vrot.slane %v2190_v42, %v2206_v6 }
 0x2e6   : > { %v2211_v47 = vrot.slane %v2190_v42, %v2210_v39  ;;  %v2215_v34 = vrot.slane %v2190_v42, %v2214_v40  ;;  %v2219_v24 = vrot.slane %v2190_v42, %v2218_v44  ;;  %v2223_v60 = vrot.slane %v2190_v42, %v2222_v49 }
 0x2e7   : > { %v2224_v61 = vcombine.low %v2195_v51, %v2199_v55  ;;  %v2225_v43 = vcombine.low %v2203_v57, %v2207_v32 }
 0x2e8   : > { %v2241_v45 = vcombine.low %v2211_v47, %v2215_v34  ;;  %v2242_v56 = vcombine.low %v2219_v24, %v2223_v60 }
 0x2e9   : > { %v2232_v53 = vrot.slane %v2224_v61, %v3210_v48  ;;  %v2239_v58 = vrot.slane %v2225_v43, %v3210_v48  ;;  %v2189_v46 = vld [vmem:[#allocation3 + $0x8] sm:$0xff] }
 0x2ea   : > { %v2249_v0 = vrot.slane %v2241_v45, %v3210_v48  ;;  %v2256_v38 = vrot.slane %v2242_v56, %v3210_v48 }
 0x2eb   : > { %v2240_v62 = vcombine.low %v2232_v53, %v2239_v58 }
 0x2ec   : > { %v2257_v54 = vcombine.low %v2249_v0, %v2256_v38 }
 0x2ed   : > { %v2260_v4 = vadd.f32 %v2240_v62, %v2188_v59 }
 0x2ee   : > { %v2261_v8 = vadd.f32 %v2257_v54, %v2189_v46 }
 0x2ef   : > { %v2262_v9 = vmax.f32 %v2260_v4, 0.0 }
 0x2f0   : > { %v2263_v10 = vmax.f32 %v2261_v8, 0.0 }
 0x2f1   : > { %2264 = vst [vmem:[#allocation3] sm:$0xff] %v2262_v9 }
 0x2f2   : > { %2265 = vst [vmem:[#allocation3 + $0x8] sm:$0xff] %v2263_v10 }
 0x2f3 PF: > { %p3280_p11 = scmp.eq.s32.totalorder %s2335_s23, 1  ;;  %s2639_s11 = smov [#allocation3]  }
 0x2f4   : > { %s2276_s13 = sshll.u32 %s2639_s11, 4  ;;  %s2277_s13 = int_to_ptr.vmem [resolvable:$true] %s2276_s13 }
 0x2f5   : > { %s2567_s14 = scalar_lea.vmem %s2277_s13, 256  ;;  %p2574_p1 = scmp.lt.s32.totalorder %s2277_s13, %s2277_s13 }
 0x2f6   : > { %p2568_p12 = scmp.ne.s32.totalorder %s2277_s13, %s2567_s14  ;;  %p2575_p2 = scmp.lt.s32.totalorder %s2567_s14, %s2567_s14 }
 0x2f8   : > { %p2569_p13 = pnand %p2568_p12, %p3280_p11  ;;  %p2576_p3 = por %p2575_p2, %p2574_p1 }
 0x2fa   : > { %p2570_p0 = pneg %p2569_p13 }
 0x2fc   : > { %p2577_p4 = pnand %p2576_p3, %p2570_p0 }
 0x2fe   : > { %2580 = shalt.err (!%p2577_p4)
}
 0x2ff   : > { %2517 = dma.vmem_to_hbm [thread:$0]  (%p3280_p11), %s2277_s13, 256, %s3315_s5, [#allocation4]  }
 0x300   : > { %2612 = dma.done.wait (%p3280_p11), [#allocation4], 256  }
 0x301   : > { %2614 = vsyncadd (%p3280_p11), [#allocation4], 4294967040 }
 0x302 PF: > { %s16_s22 = sadd.s32 1, %s2633_s22   ;;  %s3317_s18 = smov %s2621_s19 }
 0x303   : > { %p13_p5 = scmp.ge.s32.totalorder %s16_s22, 4   ;;  %s3318_s19 = smov %s2706_s27 }
 0x304   : > { %s3319_s20 = smov %s2629_s21  ;;  %s3320_s21 = smov %s3322_s24 }
 0x305   :  { %15 = sbr.rel (!%p13_p5) target bundleno = 3 (0x3), region = 119 }
 0x30a   :  { %2289 = vsyncpa [#allocation4], 1 }
 0x30b   :  { %2291 = vsyncpa [#allocation4 + $0x1], 1 }

</bundles_post_ra>
